<compile_context>
chip_gen: v6e
topology: v6e:2x2x1
jax: 0.10.0
libtpu: 0.0.40
codegen_flags: <defaults>
</compile_context>

<pallas_src>
import functools
import math

import jax
import jax.numpy as jnp
from jax.experimental import pallas as pl
from jax.experimental.pallas import tpu as pltpu

_NEG = -1e30                      # additive mask value (stands in for -inf)
_MXU_DTYPE = jnp.bfloat16         # MXU operand dtype; accumulation stays f32


# ----------------------------- in-kernel helpers ----------------------------

def _mm(a, b):
    """2-D MXU matmul (M,K)@(K,N): bf16 operands, f32 accumulate."""
    return jax.lax.dot_general(a.astype(_MXU_DTYPE), b.astype(_MXU_DTYPE),
                               dimension_numbers=((((1,), (0,))), ((), ())),
                               preferred_element_type=jnp.float32)


def _softmax_last(x, *, exact):
    m = jnp.max(x, axis=-1, keepdims=True)
    e = jnp.exp(x - m)
    s = jnp.sum(e, axis=-1, keepdims=True)
    if exact:                       # exact division where the result feeds log()/loss
        return e / s
    return e * pl.reciprocal(s, approx=True)


def _layer_norm(x, g, b, eps=1e-5):
    mu = jnp.mean(x, axis=-1, keepdims=True)
    xc = x - mu
    var = jnp.mean(xc * xc, axis=-1, keepdims=True)
    return xc * jax.lax.rsqrt(var + eps) * g + b


def _mha(x, kv, bias, w_qkv, b_qkv, w_o, b_o, *, exact_softmax=False):
    """Multi-head attention with the head dim as a leading batch dim everywhere.

    No per-head lane slicing / concatenation: Q,K,V come from head-batched einsums
    against (H,E,D) weights; the output projection is a head-batched einsum against
    (H,D,E) weights followed by a sum over heads.

    x (T,E), kv (S,E), bias (T,S) or (1,S) additive.
    w_qkv (3,H,E,D) bf16, b_qkv (3,H,1,D) f32, w_o (H,D,E) bf16, b_o (1,E) f32.
    Returns (out (T,E) f32, probs (H,T,S) f32).
    """
    H, E, D = w_qkv.shape[1], w_qkv.shape[2], w_qkv.shape[3]
    T, S = x.shape[0], kv.shape[0]
    scaling = float(D) ** -0.5
    xh = jnp.broadcast_to(x.astype(_MXU_DTYPE), (H, T, E))
    kvh = jnp.broadcast_to(kv.astype(_MXU_DTYPE), (H, S, E))
    q = (jnp.einsum("hte,hed->htd", xh, w_qkv[0],
                    preferred_element_type=jnp.float32) + b_qkv[0]) * scaling
    k = jnp.einsum("hse,hed->hsd", kvh, w_qkv[1],
                   preferred_element_type=jnp.float32) + b_qkv[1]
    v = jnp.einsum("hse,hed->hsd", kvh, w_qkv[2],
                   preferred_element_type=jnp.float32) + b_qkv[2]
    s = jnp.einsum("htd,hsd->hts", q.astype(_MXU_DTYPE), k.astype(_MXU_DTYPE),
                   preferred_element_type=jnp.float32) + bias[None]
    p = _softmax_last(s, exact=exact_softmax)
    ctx = jnp.einsum("hts,hsd->htd", p.astype(_MXU_DTYPE), v.astype(_MXU_DTYPE),
                     preferred_element_type=jnp.float32)
    out = jnp.sum(jnp.einsum("htd,hde->hte", ctx.astype(_MXU_DTYPE), w_o,
                             preferred_element_type=jnp.float32), axis=0) + b_o
    return out, p


def _nbytes(*arrays):
    return sum(int(math.prod(a.shape)) * jnp.dtype(a.dtype).itemsize for a in arrays)


# -------------------- fused decoder STACK kernel (grid = (B, L)) -------------

def _decoder_stack_kernel(x_ref, kv_ref, ext_ref, sbias_ref, ebias_ref,
                          s_w_ref, s_b_ref, s_wo_ref, s_bo_ref,
                          e_w_ref, e_b_ref, e_wo_ref, e_bo_ref,
                          fc1_w_ref, fc1_b_ref, fc2_w_ref, fc2_b_ref,
                          ln_g_ref, ln_b_ref,
                          o_ref, acc_ref):
    l = pl.program_id(1)
    nl = pl.num_programs(1)

    @pl.when(l == 0)
    def _():                                   # load the probe into the carried activation
        acc_ref[...] = x_ref[0]

    x = acc_ref[...]                           # (T, E) carried across the layer axis
    kv = kv_ref[0]                             # (S, E)
    ext = ext_ref[0]                           # (G, E)
    sbias = sbias_ref[0]                       # (T, S) additive
    ebias = ebias_ref[0]                       # (1, G) additive
    ln_g = ln_g_ref[0]                         # (3, 1, E)
    ln_b = ln_b_ref[0]

    # self attention (query = x, key/value = snt_state)
    attn, _ = _mha(x, kv, sbias, s_w_ref[0], s_b_ref[0], s_wo_ref[0], s_bo_ref[0])
    h1 = _layer_norm(x + attn, ln_g[0], ln_b[0])
    # external (graph) attention
    attn, _ = _mha(h1, ext, ebias, e_w_ref[0], e_b_ref[0], e_wo_ref[0], e_bo_ref[0])
    h2 = _layer_norm(h1 + attn, ln_g[1], ln_b[1])
    # feed-forward
    f = jnp.maximum(_mm(h2, fc1_w_ref[0]) + fc1_b_ref[0], 0.0)
    f = _mm(f, fc2_w_ref[0]) + fc2_b_ref[0]
    out = _layer_norm(h2 + f, ln_g[2], ln_b[2])

    acc_ref[...] = out

    @pl.when(l == nl - 1)
    def _():
        o_ref[0] = out.astype(o_ref.dtype)


def fused_decoder_stack(x, kv, ext, self_bias, ext_bias, sp):
    B, T, E = x.shape
    S, G = kv.shape[1], ext.shape[1]
    L, _, H, _, D = sp["s_w"].shape
    FF = sp["fc1_w"].shape[2]

    def bspec(*tail):                          # blocked over the batch grid dim
        n = len(tail)
        return pl.BlockSpec((1,) + tail, lambda b, l, _n=n: (b,) + (0,) * _n)

    def lspec(*tail):                          # blocked over the layer grid dim
        n = len(tail)
        return pl.BlockSpec((1,) + tail, lambda b, l, _n=n: (l,) + (0,) * _n)

    args = (x, kv, ext, self_bias, ext_bias,
            sp["s_w"], sp["s_b"], sp["s_wo"], sp["s_bo"],
            sp["e_w"], sp["e_b"], sp["e_wo"], sp["e_bo"],
            sp["fc1_w"], sp["fc1_b"], sp["fc2_w"], sp["fc2_b"],
            sp["ln_g"], sp["ln_b"])
    in_specs = [
        bspec(T, E), bspec(S, E), bspec(G, E), bspec(T, S), bspec(1, G),
        lspec(3, H, E, D), lspec(3, H, 1, D), lspec(H, D, E), lspec(1, E),
        lspec(3, H, E, D), lspec(3, H, 1, D), lspec(H, D, E), lspec(1, E),
        lspec(E, FF), lspec(1, FF), lspec(FF, E), lspec(1, E),
        lspec(3, 1, E), lspec(3, 1, E),
    ]

    def attn_flops(s_):
        return 4 * T * E * E + 4 * s_ * E * E + 4 * T * s_ * E
    flops = B * L * (attn_flops(S) + attn_flops(G) + 4 * T * E * FF)
    transc = B * L * H * T * (S + G)
    cost = pl.CostEstimate(flops=int(flops), transcendentals=int(transc),
                           bytes_accessed=int(_nbytes(*args) + B * T * E * 4))

    return pl.pallas_call(
        _decoder_stack_kernel,
        out_shape=jax.ShapeDtypeStruct((B, T, E), jnp.float32),
        grid_spec=pltpu.PrefetchScalarGridSpec(
            num_scalar_prefetch=0,
            grid=(B, L),
            in_specs=in_specs,
            out_specs=bspec(T, E),
            scratch_shapes=[pltpu.VMEM((T, E), jnp.float32)]),
        compiler_params=pltpu.CompilerParams(
            dimension_semantics=("parallel", "arbitrary"),
            vmem_limit_bytes=32 * 1024 * 1024),
        cost_estimate=cost,
    )(*args)


# ---------------------- fused token-generator kernel (grid = (B,)) -----------

def _token_generator_kernel(outs_ref, graph_ref, ebias_ref, cs_ref, tgt_ref,
                            a_w_ref, a_b_ref, a_wo_ref, a_bo_ref,
                            a_ln_g_ref, a_ln_b_ref,
                            tr_w_ref, tr_b_ref, gen_w_ref, gen_b_ref,
                            div_w_ref, div_b_ref,
                            out_ref, *, vocab_size, padding_idx, emit_ll):
    x = outs_ref[0]                            # (T, E)
    g = graph_ref[0]                           # (G, E)
    eb = ebias_ref[0]                          # (1, G)
    cs = cs_ref[0]                             # (G, 1) int32
    T = x.shape[0]
    G = g.shape[0]
    Vp = gen_w_ref.shape[1]                    # lane-padded vocab width (multiple of 128)

    # alignment attention (1 head); its probs ARE the alignment weights.
    attn, probs = _mha(x, g, eb, a_w_ref[...], a_b_ref[...], a_wo_ref[...],
                       a_bo_ref[...], exact_softmax=True)
    align_w = probs[0]                         # (T, G)
    h = _layer_norm(x + attn, a_ln_g_ref[...], a_ln_b_ref[...])
    tok = jnp.tanh(_mm(h, tr_w_ref[...]) + tr_b_ref[...])            # (T, TOK)

    dsm = _softmax_last(_mm(tok, div_w_ref[...]) + div_b_ref[...], exact=True)
    gen_gate, copy_gate = dsm[:, 0:1], dsm[:, 1:2]

    # generator softmax over padded vocab width; out-of-vocab lanes masked to -inf
    lane = jax.lax.broadcasted_iota(jnp.int32, (T, Vp), 1)
    gen_logits = _mm(tok, gen_w_ref[...]) + gen_b_ref[...]           # (T, Vp)
    gen_logits = jnp.where(lane >= vocab_size, _NEG, gen_logits)
    probs_full = gen_gate * _softmax_last(gen_logits, exact=True)    # zeros beyond V

    # scatter_add_(-1, copy_seq, copy_gate * alignment) via one-hot matmul
    # (bf16 operands -- one-hot is exact in bf16 -- f32 accumulate)
    iota_gv = jax.lax.broadcasted_iota(jnp.int32, (G, Vp), 1)
    one_hot = (iota_gv == cs).astype(_MXU_DTYPE)                     # (G, Vp)
    scat = _mm(copy_gate * align_w, one_hot)                         # (T, Vp)
    ll = jnp.log(probs_full + scat + 1e-12)                          # (T, Vp)

    if emit_ll:
        out_ref[0] = ll
    else:
        tgt = tgt_ref[0]                                             # (T, 1) int32
        nll = -jnp.sum(jnp.where(lane == tgt, ll, 0.0), axis=-1, keepdims=True)
        out_ref[0] = jnp.where(tgt == padding_idx, 0.0, nll)


def token_generator_call(tp, outs, graph, ext_bias, copy_seq_b, target_b, *,
                         vocab_size, padding_idx, emit_ll):
    B, T, E = outs.shape
    G = graph.shape[1]
    TOK = tp["tr_w"].shape[1]
    Vp = tp["gen_w"].shape[1]

    def bspec(*tail):
        n = len(tail)
        return pl.BlockSpec((1,) + tail, lambda b, _n=n: (b,) + (0,) * _n)

    def cspec(*shape):                         # full-array block, loaded once
        n = len(shape)
        return pl.BlockSpec(shape, lambda b, _n=n: (0,) * _n)

    args = (outs, graph, ext_bias, copy_seq_b, target_b,
            tp["a_w"], tp["a_b"], tp["a_wo"], tp["a_bo"],
            tp["a_ln_g"], tp["a_ln_b"],
            tp["tr_w"], tp["tr_b"], tp["gen_w"], tp["gen_b"],
            tp["div_w"], tp["div_b"])
    in_specs = [
        bspec(T, E), bspec(G, E), bspec(1, G), bspec(G, 1), bspec(T, 1),
        cspec(3, 1, E, E), cspec(3, 1, 1, E), cspec(1, E, E), cspec(1, E),
        cspec(1, E), cspec(1, E),
        cspec(E, TOK), cspec(1, TOK), cspec(TOK, Vp), cspec(1, Vp),
        cspec(TOK, 2), cspec(1, 2),
    ]
    if emit_ll:
        out_shape = jax.ShapeDtypeStruct((B, T, Vp), jnp.float32)
        out_spec = bspec(T, Vp)
        out_bytes = B * T * Vp * 4
    else:                                      # loss-only: no (B,T,Vp) ll is ever written
        out_shape = jax.ShapeDtypeStruct((B, T, 1), jnp.float32)
        out_spec = bspec(T, 1)
        out_bytes = B * T * 4

    attn_flops = 4 * T * E * E + 4 * G * E * E + 4 * T * G * E
    flops = B * (attn_flops + 2 * T * E * TOK + 2 * T * TOK * Vp
                 + 4 * T * TOK + 2 * T * G * Vp)
    transc = B * T * (G + 2 * Vp + TOK + 2)
    cost = pl.CostEstimate(flops=int(flops), transcendentals=int(transc),
                           bytes_accessed=int(_nbytes(*args) + out_bytes))

    return pl.pallas_call(
        functools.partial(_token_generator_kernel, vocab_size=vocab_size,
                          padding_idx=padding_idx, emit_ll=emit_ll),
        out_shape=out_shape,
        grid_spec=pltpu.PrefetchScalarGridSpec(
            num_scalar_prefetch=0, grid=(B,),
            in_specs=in_specs, out_specs=out_spec),
        compiler_params=pltpu.CompilerParams(
            dimension_semantics=("parallel",),
            vmem_limit_bytes=32 * 1024 * 1024),
        cost_estimate=cost,
    )(*args)


# ------------------------------- forward pass --------------------------------

@functools.partial(jax.jit, static_argnames=("tot_ext", "padding_idx", "work"))
def decode_layer_forward(params, probe, graph_state, snt_state, graph_padding_mask,
                         snt_padding_mask, attn_mask, copy_seq, target=None, *,
                         tot_ext, padding_idx=0, work=False):
    T, B, E = probe.shape
    S = snt_state.shape[0]
    G = graph_state.shape[0]
    V = params["tok"]["gen_w"].shape[1]
    ext_vocab = max(V, tot_ext)                         # static (no host sync in forward)
    vocab_pad = max(128, ((ext_vocab + 127) // 128) * 128)   # lane-dense ll / padded gen

    # compact additive biases, built once per forward and reused by every layer
    self_mask = jnp.zeros((B, T, S), bool)
    if snt_padding_mask is not None:
        self_mask = self_mask | snt_padding_mask.T[:, None, :]
    if attn_mask is not None:
        self_mask = self_mask | attn_mask[None, :, :]
    self_bias = jnp.where(self_mask, _NEG, 0.0).astype(jnp.float32)        # (B, T, S)
    if graph_padding_mask is not None:
        ext_bias = jnp.where(graph_padding_mask.T[:, None, :], _NEG, 0.0)
    else:
        ext_bias = jnp.zeros((B, 1, G))
    ext_bias = ext_bias.astype(jnp.float32)                                # (B, 1, G)

    # batch-first layout (transposed once per forward)
    outs = probe.transpose(1, 0, 2).astype(jnp.float32)                    # (B, T, E)
    snt = snt_state.transpose(1, 0, 2).astype(jnp.float32)                 # (B, S, E)
    graph = graph_state.transpose(1, 0, 2).astype(jnp.float32)             # (B, G, E)
    copy_b = copy_seq.T.astype(jnp.int32)[:, :, None]                      # (B, G, 1)
    if target is None:
        target_b = jnp.zeros((B, T, 1), jnp.int32)
    else:
        target_b = target.T.astype(jnp.int32)[:, :, None]                  # (B, T, 1)

    # F.dropout(probe, training=False) == identity
    outs = fused_decoder_stack(outs, snt, graph, self_bias, ext_bias, params["layers"])

    # pad generator weights/bias to the lane-dense vocab width (static under jit)
    tp = dict(params["tok"])
    tp["gen_w"] = jnp.pad(tp["gen_w"], ((0, 0), (0, vocab_pad - V)))
    tp["gen_b"] = jnp.pad(tp["gen_b"], ((0, 0), (0, vocab_pad - V)))

    if work:
        ll = token_generator_call(tp, outs, graph, ext_bias, copy_b, target_b,
                                  vocab_size=V, padding_idx=padding_idx, emit_ll=True)
        return ll.transpose(1, 0, 2)[:, :, :ext_vocab]                     # (T, B, Vt)

    loss = token_generator_call(tp, outs, graph, ext_bias, copy_b, target_b,
                                vocab_size=V, padding_idx=padding_idx, emit_ll=False)
    token_loss = loss[:, :, 0].sum(axis=1)                                 # (B,)
    token_tot = snt_padding_mask.shape[0] - snt_padding_mask.astype(jnp.float32).sum(axis=0)
    return (token_loss / token_tot).mean()


# ----------------------- deterministic init & param prep ---------------------

def init_params(key, inference_layers, embed_dim, ff_embed_dim, token_size, vocab_size):
    """PyTorch-layout parameters (nn.Linear weight is (out_features, in_features))."""
    keys = iter(jax.random.split(key, 256))

    def nrm(shape, std=0.02):
        return (std * jax.random.normal(next(keys), shape)).astype(jnp.float32)

    def mha(E):
        return {"in_proj_weight": nrm((3 * E, E)),
                "in_proj_bias": jnp.zeros((3 * E,), jnp.float32),
                "out_proj_weight": nrm((E, E)),
                "out_proj_bias": jnp.zeros((E,), jnp.float32)}

    layers = []
    for _ in range(inference_layers):
        layers.append({
            "self_attn": mha(embed_dim),
            "external_attn": mha(embed_dim),
            "fc1_w": nrm((ff_embed_dim, embed_dim)), "fc1_b": jnp.zeros((ff_embed_dim,), jnp.float32),
            "fc2_w": nrm((embed_dim, ff_embed_dim)), "fc2_b": jnp.zeros((embed_dim,), jnp.float32),
            "attn_ln_g": jnp.ones((embed_dim,), jnp.float32), "attn_ln_b": jnp.zeros((embed_dim,), jnp.float32),
            "ext_ln_g": jnp.ones((embed_dim,), jnp.float32), "ext_ln_b": jnp.zeros((embed_dim,), jnp.float32),
            "ff_ln_g": jnp.ones((embed_dim,), jnp.float32), "ff_ln_b": jnp.zeros((embed_dim,), jnp.float32),
        })
    tok = {
        "alignment": mha(embed_dim),
        "align_ln_g": jnp.ones((embed_dim,), jnp.float32), "align_ln_b": jnp.zeros((embed_dim,), jnp.float32),
        "transfer_w": nrm((token_size, embed_dim)), "transfer_b": jnp.zeros((token_size,), jnp.float32),
        "generator_w": nrm((vocab_size, token_size)), "generator_b": jnp.zeros((vocab_size,), jnp.float32),
        "diverter_w": nrm((2, token_size)), "diverter_b": jnp.zeros((2,), jnp.float32),
    }
    return {"layers": layers, "tok": tok}


def prepare_params(params, num_heads):
    """Pre-split heads, pre-transpose to (K,N), pre-cast MXU operands to bf16, and
    stack all per-layer tensors with a leading layer axis (for the grid=(B,L) kernel)."""
    E = params["layers"][0]["self_attn"]["out_proj_weight"].shape[0]

    def vec(v):
        return v.reshape(1, -1).astype(jnp.float32)

    def mat(w):
        return w.T.astype(_MXU_DTYPE)

    def heads_in(w, b, h):                     # torch in_proj: w (3E, E), b (3E,)
        d = E // h
        ws, bs = [], []
        for i in range(3):
            wi = w[i * E:(i + 1) * E]                                    # (E, E)
            ws.append(wi.reshape(h, d, E).transpose(0, 2, 1).astype(_MXU_DTYPE))  # (h, E, d)
            bs.append(b[i * E:(i + 1) * E].reshape(h, 1, d).astype(jnp.float32))
        return jnp.stack(ws, 0), jnp.stack(bs, 0)                        # (3,h,E,d), (3,h,1,d)

    def heads_out(w, b, h):                    # torch out_proj: w (E, E), b (E,)
        d = E // h
        return (w.T.reshape(h, d, E).astype(_MXU_DTYPE),                 # (h, d, E)
                b.reshape(1, E).astype(jnp.float32))

    per_layer = []
    for lp in params["layers"]:
        sw, sb = heads_in(lp["self_attn"]["in_proj_weight"], lp["self_attn"]["in_proj_bias"], num_heads)
        swo, sbo = heads_out(lp["self_attn"]["out_proj_weight"], lp["self_attn"]["out_proj_bias"], num_heads)
        ew, eb = heads_in(lp["external_attn"]["in_proj_weight"], lp["external_attn"]["in_proj_bias"], num_heads)
        ewo, ebo = heads_out(lp["external_attn"]["out_proj_weight"], lp["external_attn"]["out_proj_bias"], num_heads)
        per_layer.append({
            "s_w": sw, "s_b": sb, "s_wo": swo, "s_bo": sbo,
            "e_w": ew, "e_b": eb, "e_wo": ewo, "e_bo": ebo,
            "fc1_w": mat(lp["fc1_w"]), "fc1_b": vec(lp["fc1_b"]),
            "fc2_w": mat(lp["fc2_w"]), "fc2_b": vec(lp["fc2_b"]),
            "ln_g": jnp.stack([vec(lp["attn_ln_g"]), vec(lp["ext_ln_g"]), vec(lp["ff_ln_g"])], 0),
            "ln_b": jnp.stack([vec(lp["attn_ln_b"]), vec(lp["ext_ln_b"]), vec(lp["ff_ln_b"])], 0),
        })
    layers = {k: jnp.stack([d[k] for d in per_layer], axis=0) for k in per_layer[0]}

    tk = params["tok"]
    aw, ab = heads_in(tk["alignment"]["in_proj_weight"], tk["alignment"]["in_proj_bias"], 1)
    awo, abo = heads_out(tk["alignment"]["out_proj_weight"], tk["alignment"]["out_proj_bias"], 1)
    tok = {
        "a_w": aw, "a_b": ab, "a_wo": awo, "a_bo": abo,
        "a_ln_g": vec(tk["align_ln_g"]), "a_ln_b": vec(tk["align_ln_b"]),
        "tr_w": mat(tk["transfer_w"]), "tr_b": vec(tk["transfer_b"]),
        "gen_w": mat(tk["generator_w"]), "gen_b": vec(tk["generator_b"]),
        "div_w": mat(tk["diverter_w"]), "div_b": vec(tk["diverter_b"]),
    }
    return {"layers": layers, "tok": tok}


# --------------------------------- main --------------------------------------

if __name__ == "__main__":
    T, S, G, B = 8, 8, 8, 2        # probe/target len, snt len, graph len, batch
    E, FF, H = 32, 64, 2           # embed_dim, ff_embed_dim, num_heads
    TOK, V, PAD, L = 32, 20, 0, 2  # token_size, vocab size, padding_idx, inference_layers

    key = jax.random.PRNGKey(0)
    kparam, kprobe, kg, ks, kcopy, ktgt = jax.random.split(key, 6)
    params = prepare_params(init_params(kparam, L, E, FF, TOK, V), num_heads=H)

    probe = jax.random.normal(kprobe, (T, B, E), jnp.float32)
    graph_state = jax.random.normal(kg, (G, B, E), jnp.float32)
    snt_state = jax.random.normal(ks, (S, B, E), jnp.float32)
    graph_padding_mask = jnp.zeros((G, B), bool).at[G - 1, :].set(True)
    snt_padding_mask = jnp.zeros((S, B), bool).at[S - 1, 1].set(True)
    attn_mask = jnp.triu(jnp.ones((T, S), bool), k=1)          # True = masked (causal)
    copy_seq = jax.random.randint(kcopy, (G, B), 0, V + 6).at[0, 0].set(V + 5)
    target = jax.random.randint(ktgt, (T, B), 1, V).at[0, 0].set(PAD)

    # tot_ext (== 1 + copy_seq.max()) is resolved ONCE at input-prep time and passed as a
    # static argument, so there is no device->host sync inside the jitted forward.
    tot_ext = int(copy_seq.max()) + 1

    loss = decode_layer_forward(params, probe, graph_state, snt_state, graph_padding_mask,
                                snt_padding_mask, attn_mask, copy_seq, target,
                                tot_ext=tot_ext, padding_idx=PAD, work=False)
    jax.block_until_ready(loss)

    ll = decode_layer_forward(params, probe, graph_state, snt_state, graph_padding_mask,
                              snt_padding_mask, attn_mask, copy_seq, None,
                              tot_ext=tot_ext, padding_idx=PAD, work=True)
    jax.block_until_ready(ll)

    assert bool(jnp.isfinite(loss)), "non-finite loss"
    assert ll.shape == (T, B, max(V, tot_ext)), ll.shape
    print("KERNEL_OK")
</pallas_src>

<mosaic_0001>
module attributes {stable_mosaic.version = 11 : i64} {
  func.func @_decoder_stack_kernel(%arg0: i32, %arg1: i32, %arg2: memref<1x8x32xf32, #tpu.memory_space<vmem>>, %arg3: memref<1x8x32xf32, #tpu.memory_space<vmem>>, %arg4: memref<1x8x32xf32, #tpu.memory_space<vmem>>, %arg5: memref<1x8x8xf32, #tpu.memory_space<vmem>>, %arg6: memref<1x1x8xf32, #tpu.memory_space<vmem>>, %arg7: memref<1x3x2x32x16xbf16, #tpu.memory_space<vmem>>, %arg8: memref<1x3x2x1x16xf32, #tpu.memory_space<vmem>>, %arg9: memref<1x2x16x32xbf16, #tpu.memory_space<vmem>>, %arg10: memref<1x1x32xf32, #tpu.memory_space<vmem>>, %arg11: memref<1x3x2x32x16xbf16, #tpu.memory_space<vmem>>, %arg12: memref<1x3x2x1x16xf32, #tpu.memory_space<vmem>>, %arg13: memref<1x2x16x32xbf16, #tpu.memory_space<vmem>>, %arg14: memref<1x1x32xf32, #tpu.memory_space<vmem>>, %arg15: memref<1x32x64xbf16, #tpu.memory_space<vmem>>, %arg16: memref<1x1x64xf32, #tpu.memory_space<vmem>>, %arg17: memref<1x64x32xbf16, #tpu.memory_space<vmem>>, %arg18: memref<1x1x32xf32, #tpu.memory_space<vmem>>, %arg19: memref<1x3x1x32xf32, #tpu.memory_space<vmem>>, %arg20: memref<1x3x1x32xf32, #tpu.memory_space<vmem>>, %arg21: memref<1x8x32xf32, #tpu.memory_space<vmem>>, %arg22: memref<8x32xf32, #tpu.memory_space<vmem>>) attributes {dimension_semantics = [#tpu.dimension_semantics<parallel>, #tpu.dimension_semantics<arbitrary>], iteration_bounds = array<i64: 2, 2>, scalar_prefetch = 0 : i64, scratch_operands = 1 : i64, tpu.core_type = #tpu.core_type<tc>, window_params = [{transform_indices = @transform_0, window_bounds = array<i64: 1, 8, 32>}, {transform_indices = @transform_1, window_bounds = array<i64: 1, 8, 32>}, {transform_indices = @transform_2, window_bounds = array<i64: 1, 8, 32>}, {transform_indices = @transform_3, window_bounds = array<i64: 1, 8, 8>}, {transform_indices = @transform_4, window_bounds = array<i64: 1, 1, 8>}, {transform_indices = @transform_5, window_bounds = array<i64: 1, 3, 2, 32, 16>}, {transform_indices = @transform_6, window_bounds = array<i64: 1, 3, 2, 1, 16>}, {transform_indices = @transform_7, window_bounds = array<i64: 1, 2, 16, 32>}, {transform_indices = @transform_8, window_bounds = array<i64: 1, 1, 32>}, {transform_indices = @transform_9, window_bounds = array<i64: 1, 3, 2, 32, 16>}, {transform_indices = @transform_10, window_bounds = array<i64: 1, 3, 2, 1, 16>}, {transform_indices = @transform_11, window_bounds = array<i64: 1, 2, 16, 32>}, {transform_indices = @transform_12, window_bounds = array<i64: 1, 1, 32>}, {transform_indices = @transform_13, window_bounds = array<i64: 1, 32, 64>}, {transform_indices = @transform_14, window_bounds = array<i64: 1, 1, 64>}, {transform_indices = @transform_15, window_bounds = array<i64: 1, 64, 32>}, {transform_indices = @transform_16, window_bounds = array<i64: 1, 1, 32>}, {transform_indices = @transform_17, window_bounds = array<i64: 1, 3, 1, 32>}, {transform_indices = @transform_18, window_bounds = array<i64: 1, 3, 1, 32>}, {transform_indices = @transform_19, window_bounds = array<i64: 1, 8, 32>}]} {
    %c0_i32 = arith.constant 0 : i32
    %0 = arith.cmpi eq, %arg1, %c0_i32 : i32
    %1 = arith.extui %0 : i1 to i32
    %c0_i32_0 = arith.constant 0 : i32
    %2 = arith.cmpi ne, %1, %c0_i32_0 : i32
    scf.if %2 {
      %c0_108 = arith.constant 0 : index
      %c0_109 = arith.constant 0 : index
      %c0_110 = arith.constant 0 : index
      %235 = vector.load %arg2[%c0_108, %c0_109, %c0_110] : memref<1x8x32xf32, #tpu.memory_space<vmem>>, vector<1x8x32xf32>
      %236 = vector.shape_cast %235 : vector<1x8x32xf32> to vector<8x32xf32>
      %c0_111 = arith.constant 0 : index
      %c0_112 = arith.constant 0 : index
      %237 = vector.load %arg22[%c0_111, %c0_112] : memref<8x32xf32, #tpu.memory_space<vmem>>, vector<8x32xf32>
      tpu.vector_store %arg22[%c0_111, %c0_112], %236 {strides = array<i32>} : memref<8x32xf32, #tpu.memory_space<vmem>>, vector<8x32xf32>,
    } else {
    }
    %c0 = arith.constant 0 : index
    %c0_1 = arith.constant 0 : index
    %3 = vector.load %arg22[%c0, %c0_1] : memref<8x32xf32, #tpu.memory_space<vmem>>, vector<8x32xf32>
    %c0_2 = arith.constant 0 : index
    %c0_3 = arith.constant 0 : index
    %c0_4 = arith.constant 0 : index
    %4 = vector.load %arg3[%c0_2, %c0_3, %c0_4] : memref<1x8x32xf32, #tpu.memory_space<vmem>>, vector<1x8x32xf32>
    %5 = vector.shape_cast %4 : vector<1x8x32xf32> to vector<8x32xf32>
    %c0_5 = arith.constant 0 : index
    %c0_6 = arith.constant 0 : index
    %c0_7 = arith.constant 0 : index
    %6 = vector.load %arg4[%c0_5, %c0_6, %c0_7] : memref<1x8x32xf32, #tpu.memory_space<vmem>>, vector<1x8x32xf32>
    %7 = vector.shape_cast %6 : vector<1x8x32xf32> to vector<8x32xf32>
    %c0_8 = arith.constant 0 : index
    %c0_9 = arith.constant 0 : index
    %c0_10 = arith.constant 0 : index
    %8 = vector.load %arg5[%c0_8, %c0_9, %c0_10] : memref<1x8x8xf32, #tpu.memory_space<vmem>>, vector<1x8x8xf32>
    %9 = vector.shape_cast %8 : vector<1x8x8xf32> to vector<8x8xf32>
    %c0_11 = arith.constant 0 : index
    %c0_12 = arith.constant 0 : index
    %c0_13 = arith.constant 0 : index
    %10 = vector.load %arg6[%c0_11, %c0_12, %c0_13] : memref<1x1x8xf32, #tpu.memory_space<vmem>>, vector<1x1x8xf32>
    %11 = vector.shape_cast %10 : vector<1x1x8xf32> to vector<1x8xf32>
    %c0_14 = arith.constant 0 : index
    %c0_15 = arith.constant 0 : index
    %c0_16 = arith.constant 0 : index
    %c0_17 = arith.constant 0 : index
    %12 = vector.load %arg19[%c0_14, %c0_15, %c0_16, %c0_17] : memref<1x3x1x32xf32, #tpu.memory_space<vmem>>, vector<1x3x1x32xf32>
    %13 = vector.shape_cast %12 : vector<1x3x1x32xf32> to vector<3x1x32xf32>
    %c0_18 = arith.constant 0 : index
    %c0_19 = arith.constant 0 : index
    %c0_20 = arith.constant 0 : index
    %c0_21 = arith.constant 0 : index
    %14 = vector.load %arg20[%c0_18, %c0_19, %c0_20, %c0_21] : memref<1x3x1x32xf32, #tpu.memory_space<vmem>>, vector<1x3x1x32xf32>
    %15 = vector.shape_cast %14 : vector<1x3x1x32xf32> to vector<3x1x32xf32>
    %c0_22 = arith.constant 0 : index
    %c0_23 = arith.constant 0 : index
    %c0_24 = arith.constant 0 : index
    %c0_25 = arith.constant 0 : index
    %c0_26 = arith.constant 0 : index
    %16 = vector.load %arg7[%c0_22, %c0_23, %c0_24, %c0_25, %c0_26] : memref<1x3x2x32x16xbf16, #tpu.memory_space<vmem>>, vector<1x3x2x32x16xbf16>
    %17 = vector.shape_cast %16 : vector<1x3x2x32x16xbf16> to vector<3x2x32x16xbf16>
    %c0_27 = arith.constant 0 : index
    %c0_28 = arith.constant 0 : index
    %c0_29 = arith.constant 0 : index
    %c0_30 = arith.constant 0 : index
    %c0_31 = arith.constant 0 : index
    %18 = vector.load %arg8[%c0_27, %c0_28, %c0_29, %c0_30, %c0_31] : memref<1x3x2x1x16xf32, #tpu.memory_space<vmem>>, vector<1x3x2x1x16xf32>
    %19 = vector.shape_cast %18 : vector<1x3x2x1x16xf32> to vector<3x2x1x16xf32>
    %c0_32 = arith.constant 0 : index
    %c0_33 = arith.constant 0 : index
    %c0_34 = arith.constant 0 : index
    %c0_35 = arith.constant 0 : index
    %20 = vector.load %arg9[%c0_32, %c0_33, %c0_34, %c0_35] : memref<1x2x16x32xbf16, #tpu.memory_space<vmem>>, vector<1x2x16x32xbf16>
    %21 = vector.shape_cast %20 : vector<1x2x16x32xbf16> to vector<2x16x32xbf16>
    %c0_36 = arith.constant 0 : index
    %c0_37 = arith.constant 0 : index
    %c0_38 = arith.constant 0 : index
    %22 = vector.load %arg10[%c0_36, %c0_37, %c0_38] : memref<1x1x32xf32, #tpu.memory_space<vmem>>, vector<1x1x32xf32>
    %23 = vector.shape_cast %22 : vector<1x1x32xf32> to vector<1x32xf32>
    %24 = arith.truncf %3 : vector<8x32xf32> to vector<8x32xbf16>
    %25 = vector.shape_cast %24 : vector<8x32xbf16> to vector<1x8x32xbf16>
    %26 = vector.broadcast %25 : vector<1x8x32xbf16> to vector<2x8x32xbf16>
    %27 = arith.truncf %5 : vector<8x32xf32> to vector<8x32xbf16>
    %28 = vector.shape_cast %27 : vector<8x32xbf16> to vector<1x8x32xbf16>
    %29 = vector.broadcast %28 : vector<1x8x32xbf16> to vector<2x8x32xbf16>
    %30 = vector.extract_strided_slice %17 {offsets = [0, 0, 0, 0], sizes = [1, 2, 32, 16], strides = [1, 1, 1, 1]} : vector<3x2x32x16xbf16> to vector<1x2x32x16xbf16>
    %31 = vector.shape_cast %30 : vector<1x2x32x16xbf16> to vector<2x32x16xbf16>
    "tpu.trace_start"() <{level = 10 : i32, message = "hte,hed->htd"}> : () -> ()
    %cst = arith.constant dense<0.000000e+00> : vector<2x8x16xf32>
    %32 = tpu.matmul %26, %31, %cst {dimension_numbers = #tpu.dot_dimension_numbers<[2], [1], [1], [2], [0, 0, 0, 1, 1, 2], [0], [0]>} : vector<2x8x32xbf16>, vector<2x32x16xbf16>, vector<2x8x16xf32> -> vector<2x8x16xf32>
    "tpu.trace_stop"() : () -> ()
    %33 = vector.extract_strided_slice %19 {offsets = [0, 0, 0, 0], sizes = [1, 2, 1, 16], strides = [1, 1, 1, 1]} : vector<3x2x1x16xf32> to vector<1x2x1x16xf32>
    %34 = vector.shape_cast %33 : vector<1x2x1x16xf32> to vector<2x1x16xf32>
    %35 = vector.broadcast %34 : vector<2x1x16xf32> to vector<2x8x16xf32>
    %36 = arith.addf %32, %35 : vector<2x8x16xf32>
    %cst_39 = arith.constant 2.500000e-01 : f32
    %37 = vector.broadcast %cst_39 : f32 to vector<2x8x16xf32>
    %38 = arith.mulf %36, %37 : vector<2x8x16xf32>
    %39 = vector.extract_strided_slice %17 {offsets = [1, 0, 0, 0], sizes = [1, 2, 32, 16], strides = [1, 1, 1, 1]} : vector<3x2x32x16xbf16> to vector<1x2x32x16xbf16>
    %40 = vector.shape_cast %39 : vector<1x2x32x16xbf16> to vector<2x32x16xbf16>
    "tpu.trace_start"() <{level = 10 : i32, message = "hse,hed->hsd"}> : () -> ()
    %cst_40 = arith.constant dense<0.000000e+00> : vector<2x8x16xf32>
    %41 = tpu.matmul %29, %40, %cst_40 {dimension_numbers = #tpu.dot_dimension_numbers<[2], [1], [1], [2], [0, 0, 0, 1, 1, 2], [0], [0]>} : vector<2x8x32xbf16>, vector<2x32x16xbf16>, vector<2x8x16xf32> -> vector<2x8x16xf32>
    "tpu.trace_stop"() : () -> ()
    %42 = vector.extract_strided_slice %19 {offsets = [1, 0, 0, 0], sizes = [1, 2, 1, 16], strides = [1, 1, 1, 1]} : vector<3x2x1x16xf32> to vector<1x2x1x16xf32>
    %43 = vector.shape_cast %42 : vector<1x2x1x16xf32> to vector<2x1x16xf32>
    %44 = vector.broadcast %43 : vector<2x1x16xf32> to vector<2x8x16xf32>
    %45 = arith.addf %41, %44 : vector<2x8x16xf32>
    %46 = vector.extract_strided_slice %17 {offsets = [2, 0, 0, 0], sizes = [1, 2, 32, 16], strides = [1, 1, 1, 1]} : vector<3x2x32x16xbf16> to vector<1x2x32x16xbf16>
    %47 = vector.shape_cast %46 : vector<1x2x32x16xbf16> to vector<2x32x16xbf16>
    "tpu.trace_start"() <{level = 10 : i32, message = "hse,hed->hsd"}> : () -> ()
    %cst_41 = arith.constant dense<0.000000e+00> : vector<2x8x16xf32>
    %48 = tpu.matmul %29, %47, %cst_41 {dimension_numbers = #tpu.dot_dimension_numbers<[2], [1], [1], [2], [0, 0, 0, 1, 1, 2], [0], [0]>} : vector<2x8x32xbf16>, vector<2x32x16xbf16>, vector<2x8x16xf32> -> vector<2x8x16xf32>
    "tpu.trace_stop"() : () -> ()
    %49 = vector.extract_strided_slice %19 {offsets = [2, 0, 0, 0], sizes = [1, 2, 1, 16], strides = [1, 1, 1, 1]} : vector<3x2x1x16xf32> to vector<1x2x1x16xf32>
    %50 = vector.shape_cast %49 : vector<1x2x1x16xf32> to vector<2x1x16xf32>
    %51 = vector.broadcast %50 : vector<2x1x16xf32> to vector<2x8x16xf32>
    %52 = arith.addf %48, %51 : vector<2x8x16xf32>
    %53 = arith.truncf %38 : vector<2x8x16xf32> to vector<2x8x16xbf16>
    %54 = arith.truncf %45 : vector<2x8x16xf32> to vector<2x8x16xbf16>
    "tpu.trace_start"() <{level = 10 : i32, message = "htd,hsd->hts"}> : () -> ()
    %cst_42 = arith.constant dense<0.000000e+00> : vector<2x8x8xf32>
    %55 = tpu.matmul %53, %54, %cst_42 {dimension_numbers = #tpu.dot_dimension_numbers<[2], [2], [1], [1], [0, 0, 0, 1, 1, 1], [0], [0]>} : vector<2x8x16xbf16>, vector<2x8x16xbf16>, vector<2x8x8xf32> -> vector<2x8x8xf32>
    "tpu.trace_stop"() : () -> ()
    %56 = vector.shape_cast %9 : vector<8x8xf32> to vector<1x8x8xf32>
    %57 = vector.broadcast %56 : vector<1x8x8xf32> to vector<2x8x8xf32>
    %58 = arith.addf %55, %57 : vector<2x8x8xf32>
    %cst_43 = arith.constant dense<0xFF800000> : vector<2x8xf32>
    %59 = vector.multi_reduction <maximumf>, %58, %cst_43 [2] : vector<2x8x8xf32> to vector<2x8xf32>
    %60 = vector.shape_cast %59 : vector<2x8xf32> to vector<2x8x1xf32>
    %61 = vector.broadcast %60 : vector<2x8x1xf32> to vector<2x8x8xf32>
    %62 = arith.subf %58, %61 : vector<2x8x8xf32>
    %63 = math.exp %62 : vector<2x8x8xf32>
    %cst_44 = arith.constant dense<0.000000e+00> : vector<2x8xf32>
    %64 = vector.multi_reduction <add>, %63, %cst_44 [2] : vector<2x8x8xf32> to vector<2x8xf32>
    %65 = vector.shape_cast %64 : vector<2x8xf32> to vector<2x8x1xf32>
    %66 = tpu.reciprocal %65 {approx = true} : vector<2x8x1xf32> -> vector<2x8x1xf32>
    %67 = vector.broadcast %66 : vector<2x8x1xf32> to vector<2x8x8xf32>
    %68 = arith.mulf %63, %67 : vector<2x8x8xf32>
    %69 = arith.truncf %68 : vector<2x8x8xf32> to vector<2x8x8xbf16>
    %70 = arith.truncf %52 : vector<2x8x16xf32> to vector<2x8x16xbf16>
    "tpu.trace_start"() <{level = 10 : i32, message = "hts,hsd->htd"}> : () -> ()
    %cst_45 = arith.constant dense<0.000000e+00> : vector<2x8x16xf32>
    %71 = tpu.matmul %69, %70, %cst_45 {dimension_numbers = #tpu.dot_dimension_numbers<[2], [1], [1], [2], [0, 0, 0, 1, 1, 2], [0], [0]>} : vector<2x8x8xbf16>, vector<2x8x16xbf16>, vector<2x8x16xf32> -> vector<2x8x16xf32>
    "tpu.trace_stop"() : () -> ()
    %72 = arith.truncf %71 : vector<2x8x16xf32> to vector<2x8x16xbf16>
    "tpu.trace_start"() <{level = 10 : i32, message = "htd,hde->hte"}> : () -> ()
    %cst_46 = arith.constant dense<0.000000e+00> : vector<2x8x32xf32>
    %73 = tpu.matmul %72, %21, %cst_46 {dimension_numbers = #tpu.dot_dimension_numbers<[2], [1], [1], [2], [0, 0, 0, 1, 1, 2], [0], [0]>} : vector<2x8x16xbf16>, vector<2x16x32xbf16>, vector<2x8x32xf32> -> vector<2x8x32xf32>
    "tpu.trace_stop"() : () -> ()
    %cst_47 = arith.constant dense<0.000000e+00> : vector<8x32xf32>
    %74 = vector.multi_reduction <add>, %73, %cst_47 [0] : vector<2x8x32xf32> to vector<8x32xf32>
    %75 = vector.broadcast %23 : vector<1x32xf32> to vector<8x32xf32>
    %76 = arith.addf %74, %75 : vector<8x32xf32>
    %77 = arith.addf %3, %76 : vector<8x32xf32>
    %78 = vector.extract_strided_slice %13 {offsets = [0, 0, 0], sizes = [1, 1, 32], strides = [1, 1, 1]} : vector<3x1x32xf32> to vector<1x1x32xf32>
    %79 = vector.shape_cast %78 : vector<1x1x32xf32> to vector<1x32xf32>
    %80 = vector.extract_strided_slice %15 {offsets = [0, 0, 0], sizes = [1, 1, 32], strides = [1, 1, 1]} : vector<3x1x32xf32> to vector<1x1x32xf32>
    %81 = vector.shape_cast %80 : vector<1x1x32xf32> to vector<1x32xf32>
    %cst_48 = arith.constant dense<0.000000e+00> : vector<8xf32>
    %82 = vector.multi_reduction <add>, %77, %cst_48 [1] : vector<8x32xf32> to vector<8xf32>
    %83 = vector.shape_cast %82 : vector<8xf32> to vector<8x1xf32>
    %cst_49 = arith.constant 3.200000e+01 : f32
    %84 = vector.broadcast %cst_49 : f32 to vector<8x1xf32>
    %85 = arith.divf %83, %84 : vector<8x1xf32>
    %86 = vector.broadcast %85 : vector<8x1xf32> to vector<8x32xf32>
    %87 = arith.subf %77, %86 : vector<8x32xf32>
    %88 = arith.mulf %87, %87 : vector<8x32xf32>
    %cst_50 = arith.constant dense<0.000000e+00> : vector<8xf32>
    %89 = vector.multi_reduction <add>, %88, %cst_50 [1] : vector<8x32xf32> to vector<8xf32>
    %90 = vector.shape_cast %89 : vector<8xf32> to vector<8x1xf32>
    %cst_51 = arith.constant 3.200000e+01 : f32
    %91 = vector.broadcast %cst_51 : f32 to vector<8x1xf32>
    %92 = arith.divf %90, %91 : vector<8x1xf32>
    %cst_52 = arith.constant 9.99999974E-6 : f32
    %93 = vector.broadcast %cst_52 : f32 to vector<8x1xf32>
    %94 = arith.addf %92, %93 : vector<8x1xf32>
    %95 = math.rsqrt %94 : vector<8x1xf32>
    %96 = vector.broadcast %95 : vector<8x1xf32> to vector<8x32xf32>
    %97 = arith.mulf %87, %96 : vector<8x32xf32>
    %98 = vector.broadcast %79 : vector<1x32xf32> to vector<8x32xf32>
    %99 = arith.mulf %97, %98 : vector<8x32xf32>
    %100 = vector.broadcast %81 : vector<1x32xf32> to vector<8x32xf32>
    %101 = arith.addf %99, %100 : vector<8x32xf32>
    %c0_53 = arith.constant 0 : index
    %c0_54 = arith.constant 0 : index
    %c0_55 = arith.constant 0 : index
    %c0_56 = arith.constant 0 : index
    %c0_57 = arith.constant 0 : index
    %102 = vector.load %arg11[%c0_53, %c0_54, %c0_55, %c0_56, %c0_57] : memref<1x3x2x32x16xbf16, #tpu.memory_space<vmem>>, vector<1x3x2x32x16xbf16>
    %103 = vector.shape_cast %102 : vector<1x3x2x32x16xbf16> to vector<3x2x32x16xbf16>
    %c0_58 = arith.constant 0 : index
    %c0_59 = arith.constant 0 : index
    %c0_60 = arith.constant 0 : index
    %c0_61 = arith.constant 0 : index
    %c0_62 = arith.constant 0 : index
    %104 = vector.load %arg12[%c0_58, %c0_59, %c0_60, %c0_61, %c0_62] : memref<1x3x2x1x16xf32, #tpu.memory_space<vmem>>, vector<1x3x2x1x16xf32>
    %105 = vector.shape_cast %104 : vector<1x3x2x1x16xf32> to vector<3x2x1x16xf32>
    %c0_63 = arith.constant 0 : index
    %c0_64 = arith.constant 0 : index
    %c0_65 = arith.constant 0 : index
    %c0_66 = arith.constant 0 : index
    %106 = vector.load %arg13[%c0_63, %c0_64, %c0_65, %c0_66] : memref<1x2x16x32xbf16, #tpu.memory_space<vmem>>, vector<1x2x16x32xbf16>
    %107 = vector.shape_cast %106 : vector<1x2x16x32xbf16> to vector<2x16x32xbf16>
    %c0_67 = arith.constant 0 : index
    %c0_68 = arith.constant 0 : index
    %c0_69 = arith.constant 0 : index
    %108 = vector.load %arg14[%c0_67, %c0_68, %c0_69] : memref<1x1x32xf32, #tpu.memory_space<vmem>>, vector<1x1x32xf32>
    %109 = vector.shape_cast %108 : vector<1x1x32xf32> to vector<1x32xf32>
    %110 = arith.truncf %101 : vector<8x32xf32> to vector<8x32xbf16>
    %111 = vector.shape_cast %110 : vector<8x32xbf16> to vector<1x8x32xbf16>
    %112 = vector.broadcast %111 : vector<1x8x32xbf16> to vector<2x8x32xbf16>
    %113 = arith.truncf %7 : vector<8x32xf32> to vector<8x32xbf16>
    %114 = vector.shape_cast %113 : vector<8x32xbf16> to vector<1x8x32xbf16>
    %115 = vector.broadcast %114 : vector<1x8x32xbf16> to vector<2x8x32xbf16>
    %116 = vector.extract_strided_slice %103 {offsets = [0, 0, 0, 0], sizes = [1, 2, 32, 16], strides = [1, 1, 1, 1]} : vector<3x2x32x16xbf16> to vector<1x2x32x16xbf16>
    %117 = vector.shape_cast %116 : vector<1x2x32x16xbf16> to vector<2x32x16xbf16>
    "tpu.trace_start"() <{level = 10 : i32, message = "hte,hed->htd"}> : () -> ()
    %cst_70 = arith.constant dense<0.000000e+00> : vector<2x8x16xf32>
    %118 = tpu.matmul %112, %117, %cst_70 {dimension_numbers = #tpu.dot_dimension_numbers<[2], [1], [1], [2], [0, 0, 0, 1, 1, 2], [0], [0]>} : vector<2x8x32xbf16>, vector<2x32x16xbf16>, vector<2x8x16xf32> -> vector<2x8x16xf32>
    "tpu.trace_stop"() : () -> ()
    %119 = vector.extract_strided_slice %105 {offsets = [0, 0, 0, 0], sizes = [1, 2, 1, 16], strides = [1, 1, 1, 1]} : vector<3x2x1x16xf32> to vector<1x2x1x16xf32>
    %120 = vector.shape_cast %119 : vector<1x2x1x16xf32> to vector<2x1x16xf32>
    %121 = vector.broadcast %120 : vector<2x1x16xf32> to vector<2x8x16xf32>
    %122 = arith.addf %118, %121 : vector<2x8x16xf32>
    %cst_71 = arith.constant 2.500000e-01 : f32
    %123 = vector.broadcast %cst_71 : f32 to vector<2x8x16xf32>
    %124 = arith.mulf %122, %123 : vector<2x8x16xf32>
    %125 = vector.extract_strided_slice %103 {offsets = [1, 0, 0, 0], sizes = [1, 2, 32, 16], strides = [1, 1, 1, 1]} : vector<3x2x32x16xbf16> to vector<1x2x32x16xbf16>
    %126 = vector.shape_cast %125 : vector<1x2x32x16xbf16> to vector<2x32x16xbf16>
    "tpu.trace_start"() <{level = 10 : i32, message = "hse,hed->hsd"}> : () -> ()
    %cst_72 = arith.constant dense<0.000000e+00> : vector<2x8x16xf32>
    %127 = tpu.matmul %115, %126, %cst_72 {dimension_numbers = #tpu.dot_dimension_numbers<[2], [1], [1], [2], [0, 0, 0, 1, 1, 2], [0], [0]>} : vector<2x8x32xbf16>, vector<2x32x16xbf16>, vector<2x8x16xf32> -> vector<2x8x16xf32>
    "tpu.trace_stop"() : () -> ()
    %128 = vector.extract_strided_slice %105 {offsets = [1, 0, 0, 0], sizes = [1, 2, 1, 16], strides = [1, 1, 1, 1]} : vector<3x2x1x16xf32> to vector<1x2x1x16xf32>
    %129 = vector.shape_cast %128 : vector<1x2x1x16xf32> to vector<2x1x16xf32>
    %130 = vector.broadcast %129 : vector<2x1x16xf32> to vector<2x8x16xf32>
    %131 = arith.addf %127, %130 : vector<2x8x16xf32>
    %132 = vector.extract_strided_slice %103 {offsets = [2, 0, 0, 0], sizes = [1, 2, 32, 16], strides = [1, 1, 1, 1]} : vector<3x2x32x16xbf16> to vector<1x2x32x16xbf16>
    %133 = vector.shape_cast %132 : vector<1x2x32x16xbf16> to vector<2x32x16xbf16>
    "tpu.trace_start"() <{level = 10 : i32, message = "hse,hed->hsd"}> : () -> ()
    %cst_73 = arith.constant dense<0.000000e+00> : vector<2x8x16xf32>
    %134 = tpu.matmul %115, %133, %cst_73 {dimension_numbers = #tpu.dot_dimension_numbers<[2], [1], [1], [2], [0, 0, 0, 1, 1, 2], [0], [0]>} : vector<2x8x32xbf16>, vector<2x32x16xbf16>, vector<2x8x16xf32> -> vector<2x8x16xf32>
    "tpu.trace_stop"() : () -> ()
    %135 = vector.extract_strided_slice %105 {offsets = [2, 0, 0, 0], sizes = [1, 2, 1, 16], strides = [1, 1, 1, 1]} : vector<3x2x1x16xf32> to vector<1x2x1x16xf32>
    %136 = vector.shape_cast %135 : vector<1x2x1x16xf32> to vector<2x1x16xf32>
    %137 = vector.broadcast %136 : vector<2x1x16xf32> to vector<2x8x16xf32>
    %138 = arith.addf %134, %137 : vector<2x8x16xf32>
    %139 = arith.truncf %124 : vector<2x8x16xf32> to vector<2x8x16xbf16>
    %140 = arith.truncf %131 : vector<2x8x16xf32> to vector<2x8x16xbf16>
    "tpu.trace_start"() <{level = 10 : i32, message = "htd,hsd->hts"}> : () -> ()
    %cst_74 = arith.constant dense<0.000000e+00> : vector<2x8x8xf32>
    %141 = tpu.matmul %139, %140, %cst_74 {dimension_numbers = #tpu.dot_dimension_numbers<[2], [2], [1], [1], [0, 0, 0, 1, 1, 1], [0], [0]>} : vector<2x8x16xbf16>, vector<2x8x16xbf16>, vector<2x8x8xf32> -> vector<2x8x8xf32>
    "tpu.trace_stop"() : () -> ()
    %142 = vector.shape_cast %11 : vector<1x8xf32> to vector<1x1x8xf32>
    %143 = vector.broadcast %142 : vector<1x1x8xf32> to vector<2x8x8xf32>
    %144 = arith.addf %141, %143 : vector<2x8x8xf32>
    %cst_75 = arith.constant dense<0xFF800000> : vector<2x8xf32>
    %145 = vector.multi_reduction <maximumf>, %144, %cst_75 [2] : vector<2x8x8xf32> to vector<2x8xf32>
    %146 = vector.shape_cast %145 : vector<2x8xf32> to vector<2x8x1xf32>
    %147 = vector.broadcast %146 : vector<2x8x1xf32> to vector<2x8x8xf32>
    %148 = arith.subf %144, %147 : vector<2x8x8xf32>
    %149 = math.exp %148 : vector<2x8x8xf32>
    %cst_76 = arith.constant dense<0.000000e+00> : vector<2x8xf32>
    %150 = vector.multi_reduction <add>, %149, %cst_76 [2] : vector<2x8x8xf32> to vector<2x8xf32>
    %151 = vector.shape_cast %150 : vector<2x8xf32> to vector<2x8x1xf32>
    %152 = tpu.reciprocal %151 {approx = true} : vector<2x8x1xf32> -> vector<2x8x1xf32>
    %153 = vector.broadcast %152 : vector<2x8x1xf32> to vector<2x8x8xf32>
    %154 = arith.mulf %149, %153 : vector<2x8x8xf32>
    %155 = arith.truncf %154 : vector<2x8x8xf32> to vector<2x8x8xbf16>
    %156 = arith.truncf %138 : vector<2x8x16xf32> to vector<2x8x16xbf16>
    "tpu.trace_start"() <{level = 10 : i32, message = "hts,hsd->htd"}> : () -> ()
    %cst_77 = arith.constant dense<0.000000e+00> : vector<2x8x16xf32>
    %157 = tpu.matmul %155, %156, %cst_77 {dimension_numbers = #tpu.dot_dimension_numbers<[2], [1], [1], [2], [0, 0, 0, 1, 1, 2], [0], [0]>} : vector<2x8x8xbf16>, vector<2x8x16xbf16>, vector<2x8x16xf32> -> vector<2x8x16xf32>
    "tpu.trace_stop"() : () -> ()
    %158 = arith.truncf %157 : vector<2x8x16xf32> to vector<2x8x16xbf16>
    "tpu.trace_start"() <{level = 10 : i32, message = "htd,hde->hte"}> : () -> ()
    %cst_78 = arith.constant dense<0.000000e+00> : vector<2x8x32xf32>
    %159 = tpu.matmul %158, %107, %cst_78 {dimension_numbers = #tpu.dot_dimension_numbers<[2], [1], [1], [2], [0, 0, 0, 1, 1, 2], [0], [0]>} : vector<2x8x16xbf16>, vector<2x16x32xbf16>, vector<2x8x32xf32> -> vector<2x8x32xf32>
    "tpu.trace_stop"() : () -> ()
    %cst_79 = arith.constant dense<0.000000e+00> : vector<8x32xf32>
    %160 = vector.multi_reduction <add>, %159, %cst_79 [0] : vector<2x8x32xf32> to vector<8x32xf32>
    %161 = vector.broadcast %109 : vector<1x32xf32> to vector<8x32xf32>
    %162 = arith.addf %160, %161 : vector<8x32xf32>
    %163 = arith.addf %101, %162 : vector<8x32xf32>
    %164 = vector.extract_strided_slice %13 {offsets = [1, 0, 0], sizes = [1, 1, 32], strides = [1, 1, 1]} : vector<3x1x32xf32> to vector<1x1x32xf32>
    %165 = vector.shape_cast %164 : vector<1x1x32xf32> to vector<1x32xf32>
    %166 = vector.extract_strided_slice %15 {offsets = [1, 0, 0], sizes = [1, 1, 32], strides = [1, 1, 1]} : vector<3x1x32xf32> to vector<1x1x32xf32>
    %167 = vector.shape_cast %166 : vector<1x1x32xf32> to vector<1x32xf32>
    %cst_80 = arith.constant dense<0.000000e+00> : vector<8xf32>
    %168 = vector.multi_reduction <add>, %163, %cst_80 [1] : vector<8x32xf32> to vector<8xf32>
    %169 = vector.shape_cast %168 : vector<8xf32> to vector<8x1xf32>
    %cst_81 = arith.constant 3.200000e+01 : f32
    %170 = vector.broadcast %cst_81 : f32 to vector<8x1xf32>
    %171 = arith.divf %169, %170 : vector<8x1xf32>
    %172 = vector.broadcast %171 : vector<8x1xf32> to vector<8x32xf32>
    %173 = arith.subf %163, %172 : vector<8x32xf32>
    %174 = arith.mulf %173, %173 : vector<8x32xf32>
    %cst_82 = arith.constant dense<0.000000e+00> : vector<8xf32>
    %175 = vector.multi_reduction <add>, %174, %cst_82 [1] : vector<8x32xf32> to vector<8xf32>
    %176 = vector.shape_cast %175 : vector<8xf32> to vector<8x1xf32>
    %cst_83 = arith.constant 3.200000e+01 : f32
    %177 = vector.broadcast %cst_83 : f32 to vector<8x1xf32>
    %178 = arith.divf %176, %177 : vector<8x1xf32>
    %cst_84 = arith.constant 9.99999974E-6 : f32
    %179 = vector.broadcast %cst_84 : f32 to vector<8x1xf32>
    %180 = arith.addf %178, %179 : vector<8x1xf32>
    %181 = math.rsqrt %180 : vector<8x1xf32>
    %182 = vector.broadcast %181 : vector<8x1xf32> to vector<8x32xf32>
    %183 = arith.mulf %173, %182 : vector<8x32xf32>
    %184 = vector.broadcast %165 : vector<1x32xf32> to vector<8x32xf32>
    %185 = arith.mulf %183, %184 : vector<8x32xf32>
    %186 = vector.broadcast %167 : vector<1x32xf32> to vector<8x32xf32>
    %187 = arith.addf %185, %186 : vector<8x32xf32>
    %c0_85 = arith.constant 0 : index
    %c0_86 = arith.constant 0 : index
    %c0_87 = arith.constant 0 : index
    %188 = vector.load %arg15[%c0_85, %c0_86, %c0_87] : memref<1x32x64xbf16, #tpu.memory_space<vmem>>, vector<1x32x64xbf16>
    %189 = vector.shape_cast %188 : vector<1x32x64xbf16> to vector<32x64xbf16>
    %190 = arith.truncf %187 : vector<8x32xf32> to vector<8x32xbf16>
    %cst_88 = arith.constant dense<0.000000e+00> : vector<8x64xf32>
    %191 = tpu.matmul %190, %189, %cst_88 {dimension_numbers = #tpu.dot_dimension_numbers<[1], [0], [0], [1], [0, 0, 1, 1], [], []>} : vector<8x32xbf16>, vector<32x64xbf16>, vector<8x64xf32> -> vector<8x64xf32>
    %c0_89 = arith.constant 0 : index
    %c0_90 = arith.constant 0 : index
    %c0_91 = arith.constant 0 : index
    %192 = vector.load %arg16[%c0_89, %c0_90, %c0_91] : memref<1x1x64xf32, #tpu.memory_space<vmem>>, vector<1x1x64xf32>
    %193 = vector.shape_cast %192 : vector<1x1x64xf32> to vector<1x64xf32>
    %194 = vector.broadcast %193 : vector<1x64xf32> to vector<8x64xf32>
    %195 = arith.addf %191, %194 : vector<8x64xf32>
    %cst_92 = arith.constant 0.000000e+00 : f32
    %196 = vector.broadcast %cst_92 : f32 to vector<8x64xf32>
    %197 = arith.maximumf %195, %196 : vector<8x64xf32>
    %c0_93 = arith.constant 0 : index
    %c0_94 = arith.constant 0 : index
    %c0_95 = arith.constant 0 : index
    %198 = vector.load %arg17[%c0_93, %c0_94, %c0_95] : memref<1x64x32xbf16, #tpu.memory_space<vmem>>, vector<1x64x32xbf16>
    %199 = vector.shape_cast %198 : vector<1x64x32xbf16> to vector<64x32xbf16>
    %200 = arith.truncf %197 : vector<8x64xf32> to vector<8x64xbf16>
    %cst_96 = arith.constant dense<0.000000e+00> : vector<8x32xf32>
    %201 = tpu.matmul %200, %199, %cst_96 {dimension_numbers = #tpu.dot_dimension_numbers<[1], [0], [0], [1], [0, 0, 1, 1], [], []>} : vector<8x64xbf16>, vector<64x32xbf16>, vector<8x32xf32> -> vector<8x32xf32>
    %c0_97 = arith.constant 0 : index
    %c0_98 = arith.constant 0 : index
    %c0_99 = arith.constant 0 : index
    %202 = vector.load %arg18[%c0_97, %c0_98, %c0_99] : memref<1x1x32xf32, #tpu.memory_space<vmem>>, vector<1x1x32xf32>
    %203 = vector.shape_cast %202 : vector<1x1x32xf32> to vector<1x32xf32>
    %204 = vector.broadcast %203 : vector<1x32xf32> to vector<8x32xf32>
    %205 = arith.addf %201, %204 : vector<8x32xf32>
    %206 = arith.addf %187, %205 : vector<8x32xf32>
    %207 = vector.extract_strided_slice %13 {offsets = [2, 0, 0], sizes = [1, 1, 32], strides = [1, 1, 1]} : vector<3x1x32xf32> to vector<1x1x32xf32>
    %208 = vector.shape_cast %207 : vector<1x1x32xf32> to vector<1x32xf32>
    %209 = vector.extract_strided_slice %15 {offsets = [2, 0, 0], sizes = [1, 1, 32], strides = [1, 1, 1]} : vector<3x1x32xf32> to vector<1x1x32xf32>
    %210 = vector.shape_cast %209 : vector<1x1x32xf32> to vector<1x32xf32>
    %cst_100 = arith.constant dense<0.000000e+00> : vector<8xf32>
    %211 = vector.multi_reduction <add>, %206, %cst_100 [1] : vector<8x32xf32> to vector<8xf32>
    %212 = vector.shape_cast %211 : vector<8xf32> to vector<8x1xf32>
    %cst_101 = arith.constant 3.200000e+01 : f32
    %213 = vector.broadcast %cst_101 : f32 to vector<8x1xf32>
    %214 = arith.divf %212, %213 : vector<8x1xf32>
    %215 = vector.broadcast %214 : vector<8x1xf32> to vector<8x32xf32>
    %216 = arith.subf %206, %215 : vector<8x32xf32>
    %217 = arith.mulf %216, %216 : vector<8x32xf32>
    %cst_102 = arith.constant dense<0.000000e+00> : vector<8xf32>
    %218 = vector.multi_reduction <add>, %217, %cst_102 [1] : vector<8x32xf32> to vector<8xf32>
    %219 = vector.shape_cast %218 : vector<8xf32> to vector<8x1xf32>
    %cst_103 = arith.constant 3.200000e+01 : f32
    %220 = vector.broadcast %cst_103 : f32 to vector<8x1xf32>
    %221 = arith.divf %219, %220 : vector<8x1xf32>
    %cst_104 = arith.constant 9.99999974E-6 : f32
    %222 = vector.broadcast %cst_104 : f32 to vector<8x1xf32>
    %223 = arith.addf %221, %222 : vector<8x1xf32>
    %224 = math.rsqrt %223 : vector<8x1xf32>
    %225 = vector.broadcast %224 : vector<8x1xf32> to vector<8x32xf32>
    %226 = arith.mulf %216, %225 : vector<8x32xf32>
    %227 = vector.broadcast %208 : vector<1x32xf32> to vector<8x32xf32>
    %228 = arith.mulf %226, %227 : vector<8x32xf32>
    %229 = vector.broadcast %210 : vector<1x32xf32> to vector<8x32xf32>
    %230 = arith.addf %228, %229 : vector<8x32xf32>
    %c0_105 = arith.constant 0 : index
    %c0_106 = arith.constant 0 : index
    %231 = vector.load %arg22[%c0_105, %c0_106] : memref<8x32xf32, #tpu.memory_space<vmem>>, vector<8x32xf32>
    tpu.vector_store %arg22[%c0_105, %c0_106], %230 {strides = array<i32>} : memref<8x32xf32, #tpu.memory_space<vmem>>, vector<8x32xf32>,
    %c1_i32 = arith.constant 1 : i32
    %232 = arith.cmpi eq, %arg1, %c1_i32 : i32
    %233 = arith.extui %232 : i1 to i32
    %c0_i32_107 = arith.constant 0 : i32
    %234 = arith.cmpi ne, %233, %c0_i32_107 : i32
    scf.if %234 {
      %c0_108 = arith.constant 0 : index
      %c0_109 = arith.constant 0 : index
      %c0_110 = arith.constant 0 : index
      %235 = vector.load %arg21[%c0_108, %c0_109, %c0_110] : memref<1x8x32xf32, #tpu.memory_space<vmem>>, vector<1x8x32xf32>
      %236 = vector.shape_cast %235 : vector<1x8x32xf32> to vector<8x32xf32>
      %237 = vector.shape_cast %230 : vector<8x32xf32> to vector<1x8x32xf32>
      tpu.vector_store %arg21[%c0_108, %c0_109, %c0_110], %237 {strides = array<i32>} : memref<1x8x32xf32, #tpu.memory_space<vmem>>, vector<1x8x32xf32>,
    } else {
    }
    return
  }
  func.func @transform_0(%arg0: i32, %arg1: i32) -> (i32, i32, i32) {
    %c0_i32 = arith.constant 0 : i32
    %c0_i32_0 = arith.constant 0 : i32
    %c0_i32_1 = arith.constant 0 : i32
    return %arg0, %c0_i32, %c0_i32_0 : i32, i32, i32
  }
  func.func @transform_1(%arg0: i32, %arg1: i32) -> (i32, i32, i32) {
    %c0_i32 = arith.constant 0 : i32
    %c0_i32_0 = arith.constant 0 : i32
    %c0_i32_1 = arith.constant 0 : i32
    return %arg0, %c0_i32, %c0_i32_0 : i32, i32, i32
  }
  func.func @transform_2(%arg0: i32, %arg1: i32) -> (i32, i32, i32) {
    %c0_i32 = arith.constant 0 : i32
    %c0_i32_0 = arith.constant 0 : i32
    %c0_i32_1 = arith.constant 0 : i32
    return %arg0, %c0_i32, %c0_i32_0 : i32, i32, i32
  }
  func.func @transform_3(%arg0: i32, %arg1: i32) -> (i32, i32, i32) {
    %c0_i32 = arith.constant 0 : i32
    %c0_i32_0 = arith.constant 0 : i32
    %c0_i32_1 = arith.constant 0 : i32
    return %arg0, %c0_i32, %c0_i32_0 : i32, i32, i32
  }
  func.func @transform_4(%arg0: i32, %arg1: i32) -> (i32, i32, i32) {
    %c0_i32 = arith.constant 0 : i32
    %c0_i32_0 = arith.constant 0 : i32
    %c0_i32_1 = arith.constant 0 : i32
    return %arg0, %c0_i32, %c0_i32_0 : i32, i32, i32
  }
  func.func @transform_5(%arg0: i32, %arg1: i32) -> (i32, i32, i32, i32, i32) {
    %c0_i32 = arith.constant 0 : i32
    %c0_i32_0 = arith.constant 0 : i32
    %c0_i32_1 = arith.constant 0 : i32
    %c0_i32_2 = arith.constant 0 : i32
    %c0_i32_3 = arith.constant 0 : i32
    return %arg1, %c0_i32, %c0_i32_0, %c0_i32_1, %c0_i32_2 : i32, i32, i32, i32, i32
  }
  func.func @transform_6(%arg0: i32, %arg1: i32) -> (i32, i32, i32, i32, i32) {
    %c0_i32 = arith.constant 0 : i32
    %c0_i32_0 = arith.constant 0 : i32
    %c0_i32_1 = arith.constant 0 : i32
    %c0_i32_2 = arith.constant 0 : i32
    %c0_i32_3 = arith.constant 0 : i32
    return %arg1, %c0_i32, %c0_i32_0, %c0_i32_1, %c0_i32_2 : i32, i32, i32, i32, i32
  }
  func.func @transform_7(%arg0: i32, %arg1: i32) -> (i32, i32, i32, i32) {
    %c0_i32 = arith.constant 0 : i32
    %c0_i32_0 = arith.constant 0 : i32
    %c0_i32_1 = arith.constant 0 : i32
    %c0_i32_2 = arith.constant 0 : i32
    return %arg1, %c0_i32, %c0_i32_0, %c0_i32_1 : i32, i32, i32, i32
  }
  func.func @transform_8(%arg0: i32, %arg1: i32) -> (i32, i32, i32) {
    %c0_i32 = arith.constant 0 : i32
    %c0_i32_0 = arith.constant 0 : i32
    %c0_i32_1 = arith.constant 0 : i32
    return %arg1, %c0_i32, %c0_i32_0 : i32, i32, i32
  }
  func.func @transform_9(%arg0: i32, %arg1: i32) -> (i32, i32, i32, i32, i32) {
    %c0_i32 = arith.constant 0 : i32
    %c0_i32_0 = arith.constant 0 : i32
    %c0_i32_1 = arith.constant 0 : i32
    %c0_i32_2 = arith.constant 0 : i32
    %c0_i32_3 = arith.constant 0 : i32
    return %arg1, %c0_i32, %c0_i32_0, %c0_i32_1, %c0_i32_2 : i32, i32, i32, i32, i32
  }
  func.func @transform_10(%arg0: i32, %arg1: i32) -> (i32, i32, i32, i32, i32) {
    %c0_i32 = arith.constant 0 : i32
    %c0_i32_0 = arith.constant 0 : i32
    %c0_i32_1 = arith.constant 0 : i32
    %c0_i32_2 = arith.constant 0 : i32
    %c0_i32_3 = arith.constant 0 : i32
    return %arg1, %c0_i32, %c0_i32_0, %c0_i32_1, %c0_i32_2 : i32, i32, i32, i32, i32
  }
  func.func @transform_11(%arg0: i32, %arg1: i32) -> (i32, i32, i32, i32) {
    %c0_i32 = arith.constant 0 : i32
    %c0_i32_0 = arith.constant 0 : i32
    %c0_i32_1 = arith.constant 0 : i32
    %c0_i32_2 = arith.constant 0 : i32
    return %arg1, %c0_i32, %c0_i32_0, %c0_i32_1 : i32, i32, i32, i32
  }
  func.func @transform_12(%arg0: i32, %arg1: i32) -> (i32, i32, i32) {
    %c0_i32 = arith.constant 0 : i32
    %c0_i32_0 = arith.constant 0 : i32
    %c0_i32_1 = arith.constant 0 : i32
    return %arg1, %c0_i32, %c0_i32_0 : i32, i32, i32
  }
  func.func @transform_13(%arg0: i32, %arg1: i32) -> (i32, i32, i32) {
    %c0_i32 = arith.constant 0 : i32
    %c0_i32_0 = arith.constant 0 : i32
    %c0_i32_1 = arith.constant 0 : i32
    return %arg1, %c0_i32, %c0_i32_0 : i32, i32, i32
  }
  func.func @transform_14(%arg0: i32, %arg1: i32) -> (i32, i32, i32) {
    %c0_i32 = arith.constant 0 : i32
    %c0_i32_0 = arith.constant 0 : i32
    %c0_i32_1 = arith.constant 0 : i32
    return %arg1, %c0_i32, %c0_i32_0 : i32, i32, i32
  }
  func.func @transform_15(%arg0: i32, %arg1: i32) -> (i32, i32, i32) {
    %c0_i32 = arith.constant 0 : i32
    %c0_i32_0 = arith.constant 0 : i32
    %c0_i32_1 = arith.constant 0 : i32
    return %arg1, %c0_i32, %c0_i32_0 : i32, i32, i32
  }
  func.func @transform_16(%arg0: i32, %arg1: i32) -> (i32, i32, i32) {
    %c0_i32 = arith.constant 0 : i32
    %c0_i32_0 = arith.constant 0 : i32
    %c0_i32_1 = arith.constant 0 : i32
    return %arg1, %c0_i32, %c0_i32_0 : i32, i32, i32
  }
  func.func @transform_17(%arg0: i32, %arg1: i32) -> (i32, i32, i32, i32) {
    %c0_i32 = arith.constant 0 : i32
    %c0_i32_0 = arith.constant 0 : i32
    %c0_i32_1 = arith.constant 0 : i32
    %c0_i32_2 = arith.constant 0 : i32
    return %arg1, %c0_i32, %c0_i32_0, %c0_i32_1 : i32, i32, i32, i32
  }
  func.func @transform_18(%arg0: i32, %arg1: i32) -> (i32, i32, i32, i32) {
    %c0_i32 = arith.constant 0 : i32
    %c0_i32_0 = arith.constant 0 : i32
    %c0_i32_1 = arith.constant 0 : i32
    %c0_i32_2 = arith.constant 0 : i32
    return %arg1, %c0_i32, %c0_i32_0, %c0_i32_1 : i32, i32, i32, i32
  }
  func.func @transform_19(%arg0: i32, %arg1: i32) -> (i32, i32, i32) {
    %c0_i32 = arith.constant 0 : i32
    %c0_i32_0 = arith.constant 0 : i32
    %c0_i32_1 = arith.constant 0 : i32
    return %arg0, %c0_i32, %c0_i32_0 : i32, i32, i32
  }
}

module attributes {stable_mosaic.version = 11 : i64} {
  func.func @_token_generator_kernel(%arg0: i32, %arg1: memref<1x8x32xf32, #tpu.memory_space<vmem>>, %arg2: memref<1x8x32xf32, #tpu.memory_space<vmem>>, %arg3: memref<1x1x8xf32, #tpu.memory_space<vmem>>, %arg4: memref<1x8x1xi32, #tpu.memory_space<vmem>>, %arg5: memref<1x8x1xi32, #tpu.memory_space<vmem>>, %arg6: memref<3x1x32x32xbf16, #tpu.memory_space<vmem>>, %arg7: memref<3x1x1x32xf32, #tpu.memory_space<vmem>>, %arg8: memref<1x32x32xbf16, #tpu.memory_space<vmem>>, %arg9: memref<1x32xf32, #tpu.memory_space<vmem>>, %arg10: memref<1x32xf32, #tpu.memory_space<vmem>>, %arg11: memref<1x32xf32, #tpu.memory_space<vmem>>, %arg12: memref<32x32xbf16, #tpu.memory_space<vmem>>, %arg13: memref<1x32xf32, #tpu.memory_space<vmem>>, %arg14: memref<32x128xbf16, #tpu.memory_space<vmem>>, %arg15: memref<1x128xf32, #tpu.memory_space<vmem>>, %arg16: memref<32x2xbf16, #tpu.memory_space<vmem>>, %arg17: memref<1x2xf32, #tpu.memory_space<vmem>>, %arg18: memref<1x8x1xf32, #tpu.memory_space<vmem>>) attributes {dimension_semantics = [#tpu.dimension_semantics<parallel>], iteration_bounds = array<i64: 2>, scalar_prefetch = 0 : i64, scratch_operands = 0 : i64, tpu.core_type = #tpu.core_type<tc>, window_params = [{transform_indices = @transform_0, window_bounds = array<i64: 1, 8, 32>}, {transform_indices = @transform_1, window_bounds = array<i64: 1, 8, 32>}, {transform_indices = @transform_2, window_bounds = array<i64: 1, 1, 8>}, {transform_indices = @transform_3, window_bounds = array<i64: 1, 8, 1>}, {transform_indices = @transform_4, window_bounds = array<i64: 1, 8, 1>}, {pipeline_mode = #tpu.pipeline_mode<synchronous>, transform_indices = @transform_5, window_bounds = array<i64: 3, 1, 32, 32>}, {pipeline_mode = #tpu.pipeline_mode<synchronous>, transform_indices = @transform_6, window_bounds = array<i64: 3, 1, 1, 32>}, {pipeline_mode = #tpu.pipeline_mode<synchronous>, transform_indices = @transform_7, window_bounds = array<i64: 1, 32, 32>}, {pipeline_mode = #tpu.pipeline_mode<synchronous>, transform_indices = @transform_8, window_bounds = array<i64: 1, 32>}, {pipeline_mode = #tpu.pipeline_mode<synchronous>, transform_indices = @transform_9, window_bounds = array<i64: 1, 32>}, {pipeline_mode = #tpu.pipeline_mode<synchronous>, transform_indices = @transform_10, window_bounds = array<i64: 1, 32>}, {pipeline_mode = #tpu.pipeline_mode<synchronous>, transform_indices = @transform_11, window_bounds = array<i64: 32, 32>}, {pipeline_mode = #tpu.pipeline_mode<synchronous>, transform_indices = @transform_12, window_bounds = array<i64: 1, 32>}, {pipeline_mode = #tpu.pipeline_mode<synchronous>, transform_indices = @transform_13, window_bounds = array<i64: 32, 128>}, {pipeline_mode = #tpu.pipeline_mode<synchronous>, transform_indices = @transform_14, window_bounds = array<i64: 1, 128>}, {pipeline_mode = #tpu.pipeline_mode<synchronous>, transform_indices = @transform_15, window_bounds = array<i64: 32, 2>}, {pipeline_mode = #tpu.pipeline_mode<synchronous>, transform_indices = @transform_16, window_bounds = array<i64: 1, 2>}, {transform_indices = @transform_17, window_bounds = array<i64: 1, 8, 1>}]} {
    %c0 = arith.constant 0 : index
    %c0_0 = arith.constant 0 : index
    %c0_1 = arith.constant 0 : index
    %0 = vector.load %arg1[%c0, %c0_0, %c0_1] : memref<1x8x32xf32, #tpu.memory_space<vmem>>, vector<1x8x32xf32>
    %1 = vector.shape_cast %0 : vector<1x8x32xf32> to vector<8x32xf32>
    %c0_2 = arith.constant 0 : index
    %c0_3 = arith.constant 0 : index
    %c0_4 = arith.constant 0 : index
    %2 = vector.load %arg2[%c0_2, %c0_3, %c0_4] : memref<1x8x32xf32, #tpu.memory_space<vmem>>, vector<1x8x32xf32>
    %3 = vector.shape_cast %2 : vector<1x8x32xf32> to vector<8x32xf32>
    %c0_5 = arith.constant 0 : index
    %c0_6 = arith.constant 0 : index
    %c0_7 = arith.constant 0 : index
    %4 = vector.load %arg3[%c0_5, %c0_6, %c0_7] : memref<1x1x8xf32, #tpu.memory_space<vmem>>, vector<1x1x8xf32>
    %5 = vector.shape_cast %4 : vector<1x1x8xf32> to vector<1x8xf32>
    %c0_8 = arith.constant 0 : index
    %c0_9 = arith.constant 0 : index
    %c0_10 = arith.constant 0 : index
    %6 = vector.load %arg4[%c0_8, %c0_9, %c0_10] : memref<1x8x1xi32, #tpu.memory_space<vmem>>, vector<1x8x1xi32>
    %7 = vector.shape_cast %6 : vector<1x8x1xi32> to vector<8x1xi32>
    %c0_11 = arith.constant 0 : index
    %c0_12 = arith.constant 0 : index
    %c0_13 = arith.constant 0 : index
    %c0_14 = arith.constant 0 : index
    %8 = vector.load %arg6[%c0_11, %c0_12, %c0_13, %c0_14] : memref<3x1x32x32xbf16, #tpu.memory_space<vmem>>, vector<3x1x32x32xbf16>
    %c0_15 = arith.constant 0 : index
    %c0_16 = arith.constant 0 : index
    %c0_17 = arith.constant 0 : index
    %c0_18 = arith.constant 0 : index
    %9 = vector.load %arg7[%c0_15, %c0_16, %c0_17, %c0_18] : memref<3x1x1x32xf32, #tpu.memory_space<vmem>>, vector<3x1x1x32xf32>
    %c0_19 = arith.constant 0 : index
    %c0_20 = arith.constant 0 : index
    %c0_21 = arith.constant 0 : index
    %10 = vector.load %arg8[%c0_19, %c0_20, %c0_21] : memref<1x32x32xbf16, #tpu.memory_space<vmem>>, vector<1x32x32xbf16>
    %c0_22 = arith.constant 0 : index
    %c0_23 = arith.constant 0 : index
    %11 = vector.load %arg9[%c0_22, %c0_23] : memref<1x32xf32, #tpu.memory_space<vmem>>, vector<1x32xf32>
    %12 = arith.truncf %1 : vector<8x32xf32> to vector<8x32xbf16>
    %13 = vector.shape_cast %12 : vector<8x32xbf16> to vector<1x8x32xbf16>
    %14 = arith.truncf %3 : vector<8x32xf32> to vector<8x32xbf16>
    %15 = vector.shape_cast %14 : vector<8x32xbf16> to vector<1x8x32xbf16>
    %16 = vector.extract_strided_slice %8 {offsets = [0, 0, 0, 0], sizes = [1, 1, 32, 32], strides = [1, 1, 1, 1]} : vector<3x1x32x32xbf16> to vector<1x1x32x32xbf16>
    %17 = vector.shape_cast %16 : vector<1x1x32x32xbf16> to vector<1x32x32xbf16>
    "tpu.trace_start"() <{level = 10 : i32, message = "hte,hed->htd"}> : () -> ()
    %cst = arith.constant dense<0.000000e+00> : vector<1x8x32xf32>
    %18 = tpu.matmul %13, %17, %cst {dimension_numbers = #tpu.dot_dimension_numbers<[2], [1], [1], [2], [0, 0, 0, 1, 1, 2], [0], [0]>} : vector<1x8x32xbf16>, vector<1x32x32xbf16>, vector<1x8x32xf32> -> vector<1x8x32xf32>
    "tpu.trace_stop"() : () -> ()
    %19 = vector.extract_strided_slice %9 {offsets = [0, 0, 0, 0], sizes = [1, 1, 1, 32], strides = [1, 1, 1, 1]} : vector<3x1x1x32xf32> to vector<1x1x1x32xf32>
    %20 = vector.shape_cast %19 : vector<1x1x1x32xf32> to vector<1x1x32xf32>
    %21 = vector.broadcast %20 : vector<1x1x32xf32> to vector<1x8x32xf32>
    %22 = arith.addf %18, %21 : vector<1x8x32xf32>
    %cst_24 = arith.constant 0.176776692 : f32
    %23 = vector.broadcast %cst_24 : f32 to vector<1x8x32xf32>
    %24 = arith.mulf %22, %23 : vector<1x8x32xf32>
    %25 = vector.extract_strided_slice %8 {offsets = [1, 0, 0, 0], sizes = [1, 1, 32, 32], strides = [1, 1, 1, 1]} : vector<3x1x32x32xbf16> to vector<1x1x32x32xbf16>
    %26 = vector.shape_cast %25 : vector<1x1x32x32xbf16> to vector<1x32x32xbf16>
    "tpu.trace_start"() <{level = 10 : i32, message = "hse,hed->hsd"}> : () -> ()
    %cst_25 = arith.constant dense<0.000000e+00> : vector<1x8x32xf32>
    %27 = tpu.matmul %15, %26, %cst_25 {dimension_numbers = #tpu.dot_dimension_numbers<[2], [1], [1], [2], [0, 0, 0, 1, 1, 2], [0], [0]>} : vector<1x8x32xbf16>, vector<1x32x32xbf16>, vector<1x8x32xf32> -> vector<1x8x32xf32>
    "tpu.trace_stop"() : () -> ()
    %28 = vector.extract_strided_slice %9 {offsets = [1, 0, 0, 0], sizes = [1, 1, 1, 32], strides = [1, 1, 1, 1]} : vector<3x1x1x32xf32> to vector<1x1x1x32xf32>
    %29 = vector.shape_cast %28 : vector<1x1x1x32xf32> to vector<1x1x32xf32>
    %30 = vector.broadcast %29 : vector<1x1x32xf32> to vector<1x8x32xf32>
    %31 = arith.addf %27, %30 : vector<1x8x32xf32>
    %32 = vector.extract_strided_slice %8 {offsets = [2, 0, 0, 0], sizes = [1, 1, 32, 32], strides = [1, 1, 1, 1]} : vector<3x1x32x32xbf16> to vector<1x1x32x32xbf16>
    %33 = vector.shape_cast %32 : vector<1x1x32x32xbf16> to vector<1x32x32xbf16>
    "tpu.trace_start"() <{level = 10 : i32, message = "hse,hed->hsd"}> : () -> ()
    %cst_26 = arith.constant dense<0.000000e+00> : vector<1x8x32xf32>
    %34 = tpu.matmul %15, %33, %cst_26 {dimension_numbers = #tpu.dot_dimension_numbers<[2], [1], [1], [2], [0, 0, 0, 1, 1, 2], [0], [0]>} : vector<1x8x32xbf16>, vector<1x32x32xbf16>, vector<1x8x32xf32> -> vector<1x8x32xf32>
    "tpu.trace_stop"() : () -> ()
    %35 = vector.extract_strided_slice %9 {offsets = [2, 0, 0, 0], sizes = [1, 1, 1, 32], strides = [1, 1, 1, 1]} : vector<3x1x1x32xf32> to vector<1x1x1x32xf32>
    %36 = vector.shape_cast %35 : vector<1x1x1x32xf32> to vector<1x1x32xf32>
    %37 = vector.broadcast %36 : vector<1x1x32xf32> to vector<1x8x32xf32>
    %38 = arith.addf %34, %37 : vector<1x8x32xf32>
    %39 = arith.truncf %24 : vector<1x8x32xf32> to vector<1x8x32xbf16>
    %40 = arith.truncf %31 : vector<1x8x32xf32> to vector<1x8x32xbf16>
    "tpu.trace_start"() <{level = 10 : i32, message = "htd,hsd->hts"}> : () -> ()
    %cst_27 = arith.constant dense<0.000000e+00> : vector<1x8x8xf32>
    %41 = tpu.matmul %39, %40, %cst_27 {dimension_numbers = #tpu.dot_dimension_numbers<[2], [2], [1], [1], [0, 0, 0, 1, 1, 1], [0], [0]>} : vector<1x8x32xbf16>, vector<1x8x32xbf16>, vector<1x8x8xf32> -> vector<1x8x8xf32>
    "tpu.trace_stop"() : () -> ()
    %42 = vector.shape_cast %5 : vector<1x8xf32> to vector<1x1x8xf32>
    %43 = vector.broadcast %42 : vector<1x1x8xf32> to vector<1x8x8xf32>
    %44 = arith.addf %41, %43 : vector<1x8x8xf32>
    %cst_28 = arith.constant dense<0xFF800000> : vector<1x8xf32>
    %45 = vector.multi_reduction <maximumf>, %44, %cst_28 [2] : vector<1x8x8xf32> to vector<1x8xf32>
    %46 = vector.shape_cast %45 : vector<1x8xf32> to vector<1x8x1xf32>
    %47 = vector.broadcast %46 : vector<1x8x1xf32> to vector<1x8x8xf32>
    %48 = arith.subf %44, %47 : vector<1x8x8xf32>
    %49 = math.exp %48 : vector<1x8x8xf32>
    %cst_29 = arith.constant dense<0.000000e+00> : vector<1x8xf32>
    %50 = vector.multi_reduction <add>, %49, %cst_29 [2] : vector<1x8x8xf32> to vector<1x8xf32>
    %51 = vector.shape_cast %50 : vector<1x8xf32> to vector<1x8x1xf32>
    %52 = vector.broadcast %51 : vector<1x8x1xf32> to vector<1x8x8xf32>
    %53 = arith.divf %49, %52 : vector<1x8x8xf32>
    %54 = arith.truncf %53 : vector<1x8x8xf32> to vector<1x8x8xbf16>
    %55 = arith.truncf %38 : vector<1x8x32xf32> to vector<1x8x32xbf16>
    "tpu.trace_start"() <{level = 10 : i32, message = "hts,hsd->htd"}> : () -> ()
    %cst_30 = arith.constant dense<0.000000e+00> : vector<1x8x32xf32>
    %56 = tpu.matmul %54, %55, %cst_30 {dimension_numbers = #tpu.dot_dimension_numbers<[2], [1], [1], [2], [0, 0, 0, 1, 1, 2], [0], [0]>} : vector<1x8x8xbf16>, vector<1x8x32xbf16>, vector<1x8x32xf32> -> vector<1x8x32xf32>
    "tpu.trace_stop"() : () -> ()
    %57 = arith.truncf %56 : vector<1x8x32xf32> to vector<1x8x32xbf16>
    "tpu.trace_start"() <{level = 10 : i32, message = "htd,hde->hte"}> : () -> ()
    %cst_31 = arith.constant dense<0.000000e+00> : vector<1x8x32xf32>
    %58 = tpu.matmul %57, %10, %cst_31 {dimension_numbers = #tpu.dot_dimension_numbers<[2], [1], [1], [2], [0, 0, 0, 1, 1, 2], [0], [0]>} : vector<1x8x32xbf16>, vector<1x32x32xbf16>, vector<1x8x32xf32> -> vector<1x8x32xf32>
    "tpu.trace_stop"() : () -> ()
    %cst_32 = arith.constant dense<0.000000e+00> : vector<8x32xf32>
    %59 = vector.multi_reduction <add>, %58, %cst_32 [0] : vector<1x8x32xf32> to vector<8x32xf32>
    %60 = vector.broadcast %11 : vector<1x32xf32> to vector<8x32xf32>
    %61 = arith.addf %59, %60 : vector<8x32xf32>
    %62 = vector.shape_cast %53 : vector<1x8x8xf32> to vector<8x8xf32>
    %63 = arith.addf %1, %61 : vector<8x32xf32>
    %c0_33 = arith.constant 0 : index
    %c0_34 = arith.constant 0 : index
    %64 = vector.load %arg10[%c0_33, %c0_34] : memref<1x32xf32, #tpu.memory_space<vmem>>, vector<1x32xf32>
    %c0_35 = arith.constant 0 : index
    %c0_36 = arith.constant 0 : index
    %65 = vector.load %arg11[%c0_35, %c0_36] : memref<1x32xf32, #tpu.memory_space<vmem>>, vector<1x32xf32>
    %cst_37 = arith.constant dense<0.000000e+00> : vector<8xf32>
    %66 = vector.multi_reduction <add>, %63, %cst_37 [1] : vector<8x32xf32> to vector<8xf32>
    %67 = vector.shape_cast %66 : vector<8xf32> to vector<8x1xf32>
    %cst_38 = arith.constant 3.200000e+01 : f32
    %68 = vector.broadcast %cst_38 : f32 to vector<8x1xf32>
    %69 = arith.divf %67, %68 : vector<8x1xf32>
    %70 = vector.broadcast %69 : vector<8x1xf32> to vector<8x32xf32>
    %71 = arith.subf %63, %70 : vector<8x32xf32>
    %72 = arith.mulf %71, %71 : vector<8x32xf32>
    %cst_39 = arith.constant dense<0.000000e+00> : vector<8xf32>
    %73 = vector.multi_reduction <add>, %72, %cst_39 [1] : vector<8x32xf32> to vector<8xf32>
    %74 = vector.shape_cast %73 : vector<8xf32> to vector<8x1xf32>
    %cst_40 = arith.constant 3.200000e+01 : f32
    %75 = vector.broadcast %cst_40 : f32 to vector<8x1xf32>
    %76 = arith.divf %74, %75 : vector<8x1xf32>
    %cst_41 = arith.constant 9.99999974E-6 : f32
    %77 = vector.broadcast %cst_41 : f32 to vector<8x1xf32>
    %78 = arith.addf %76, %77 : vector<8x1xf32>
    %79 = math.rsqrt %78 : vector<8x1xf32>
    %80 = vector.broadcast %79 : vector<8x1xf32> to vector<8x32xf32>
    %81 = arith.mulf %71, %80 : vector<8x32xf32>
    %82 = vector.broadcast %64 : vector<1x32xf32> to vector<8x32xf32>
    %83 = arith.mulf %81, %82 : vector<8x32xf32>
    %84 = vector.broadcast %65 : vector<1x32xf32> to vector<8x32xf32>
    %85 = arith.addf %83, %84 : vector<8x32xf32>
    %c0_42 = arith.constant 0 : index
    %c0_43 = arith.constant 0 : index
    %86 = vector.load %arg12[%c0_42, %c0_43] : memref<32x32xbf16, #tpu.memory_space<vmem>>, vector<32x32xbf16>
    %87 = arith.truncf %85 : vector<8x32xf32> to vector<8x32xbf16>
    %cst_44 = arith.constant dense<0.000000e+00> : vector<8x32xf32>
    %88 = tpu.matmul %87, %86, %cst_44 {dimension_numbers = #tpu.dot_dimension_numbers<[1], [0], [0], [1], [0, 0, 1, 1], [], []>} : vector<8x32xbf16>, vector<32x32xbf16>, vector<8x32xf32> -> vector<8x32xf32>
    %c0_45 = arith.constant 0 : index
    %c0_46 = arith.constant 0 : index
    %89 = vector.load %arg13[%c0_45, %c0_46] : memref<1x32xf32, #tpu.memory_space<vmem>>, vector<1x32xf32>
    %90 = vector.broadcast %89 : vector<1x32xf32> to vector<8x32xf32>
    %91 = arith.addf %88, %90 : vector<8x32xf32>
    %92 = math.tanh %91 : vector<8x32xf32>
    %c0_47 = arith.constant 0 : index
    %c0_48 = arith.constant 0 : index
    %93 = vector.load %arg16[%c0_47, %c0_48] : memref<32x2xbf16, #tpu.memory_space<vmem>>, vector<32x2xbf16>
    %94 = arith.truncf %92 : vector<8x32xf32> to vector<8x32xbf16>
    %cst_49 = arith.constant dense<0.000000e+00> : vector<8x2xf32>
    %95 = tpu.matmul %94, %93, %cst_49 {dimension_numbers = #tpu.dot_dimension_numbers<[1], [0], [0], [1], [0, 0, 1, 1], [], []>} : vector<8x32xbf16>, vector<32x2xbf16>, vector<8x2xf32> -> vector<8x2xf32>
    %c0_50 = arith.constant 0 : index
    %c0_51 = arith.constant 0 : index
    %96 = vector.load %arg17[%c0_50, %c0_51] : memref<1x2xf32, #tpu.memory_space<vmem>>, vector<1x2xf32>
    %97 = vector.broadcast %96 : vector<1x2xf32> to vector<8x2xf32>
    %98 = arith.addf %95, %97 : vector<8x2xf32>
    %cst_52 = arith.constant dense<0xFF800000> : vector<8xf32>
    %99 = vector.multi_reduction <maximumf>, %98, %cst_52 [1] : vector<8x2xf32> to vector<8xf32>
    %100 = vector.shape_cast %99 : vector<8xf32> to vector<8x1xf32>
    %101 = vector.broadcast %100 : vector<8x1xf32> to vector<8x2xf32>
    %102 = arith.subf %98, %101 : vector<8x2xf32>
    %103 = math.exp %102 : vector<8x2xf32>
    %cst_53 = arith.constant dense<0.000000e+00> : vector<8xf32>
    %104 = vector.multi_reduction <add>, %103, %cst_53 [1] : vector<8x2xf32> to vector<8xf32>
    %105 = vector.shape_cast %104 : vector<8xf32> to vector<8x1xf32>
    %106 = vector.broadcast %105 : vector<8x1xf32> to vector<8x2xf32>
    %107 = arith.divf %103, %106 : vector<8x2xf32>
    %108 = vector.extract_strided_slice %107 {offsets = [0, 0], sizes = [8, 1], strides = [1, 1]} : vector<8x2xf32> to vector<8x1xf32>
    %109 = vector.extract_strided_slice %107 {offsets = [0, 1], sizes = [8, 1], strides = [1, 1]} : vector<8x2xf32> to vector<8x1xf32>
    %110 = tpu.iota {dimensions = array<i32: 1>} : vector<8x128xi32>
    %c0_54 = arith.constant 0 : index
    %c0_55 = arith.constant 0 : index
    %111 = vector.load %arg14[%c0_54, %c0_55] : memref<32x128xbf16, #tpu.memory_space<vmem>>, vector<32x128xbf16>
    %112 = arith.truncf %92 : vector<8x32xf32> to vector<8x32xbf16>
    %cst_56 = arith.constant dense<0.000000e+00> : vector<8x128xf32>
    %113 = tpu.matmul %112, %111, %cst_56 {dimension_numbers = #tpu.dot_dimension_numbers<[1], [0], [0], [1], [0, 0, 1, 1], [], []>} : vector<8x32xbf16>, vector<32x128xbf16>, vector<8x128xf32> -> vector<8x128xf32>
    %c0_57 = arith.constant 0 : index
    %c0_58 = arith.constant 0 : index
    %114 = vector.load %arg15[%c0_57, %c0_58] : memref<1x128xf32, #tpu.memory_space<vmem>>, vector<1x128xf32>
    %115 = vector.broadcast %114 : vector<1x128xf32> to vector<8x128xf32>
    %116 = arith.addf %113, %115 : vector<8x128xf32>
    %c20_i32 = arith.constant 20 : i32
    %117 = vector.broadcast %c20_i32 : i32 to vector<8x128xi32>
    %118 = arith.cmpi sge, %110, %117 : vector<8x128xi32>
    %cst_59 = arith.constant -1.000000e+30 : f32
    %119 = vector.broadcast %cst_59 : f32 to vector<8x128xf32>
    %120 = arith.select %118, %119, %116 : vector<8x128xi1>, vector<8x128xf32>
    %cst_60 = arith.constant dense<0xFF800000> : vector<8xf32>
    %121 = vector.multi_reduction <maximumf>, %120, %cst_60 [1] : vector<8x128xf32> to vector<8xf32>
    %122 = vector.shape_cast %121 : vector<8xf32> to vector<8x1xf32>
    %123 = vector.broadcast %122 : vector<8x1xf32> to vector<8x128xf32>
    %124 = arith.subf %120, %123 : vector<8x128xf32>
    %125 = math.exp %124 : vector<8x128xf32>
    %cst_61 = arith.constant dense<0.000000e+00> : vector<8xf32>
    %126 = vector.multi_reduction <add>, %125, %cst_61 [1] : vector<8x128xf32> to vector<8xf32>
    %127 = vector.shape_cast %126 : vector<8xf32> to vector<8x1xf32>
    %128 = vector.broadcast %127 : vector<8x1xf32> to vector<8x128xf32>
    %129 = arith.divf %125, %128 : vector<8x128xf32>
    %130 = vector.broadcast %108 : vector<8x1xf32> to vector<8x128xf32>
    %131 = arith.mulf %130, %129 : vector<8x128xf32>
    %132 = tpu.iota {dimensions = array<i32: 1>} : vector<8x128xi32>
    %133 = vector.broadcast %7 : vector<8x1xi32> to vector<8x128xi32>
    %134 = arith.cmpi eq, %132, %133 : vector<8x128xi32>
    %135 = arith.extui %134 : vector<8x128xi1> to vector<8x128xi32>
    %136 = arith.sitofp %135 : vector<8x128xi32> to vector<8x128xf32>
    %137 = arith.truncf %136 : vector<8x128xf32> to vector<8x128xbf16>
    %138 = vector.broadcast %109 : vector<8x1xf32> to vector<8x8xf32>
    %139 = arith.mulf %138, %62 : vector<8x8xf32>
    %140 = arith.truncf %139 : vector<8x8xf32> to vector<8x8xbf16>
    %cst_62 = arith.constant dense<0.000000e+00> : vector<8x128xf32>
    %141 = tpu.matmul %140, %137, %cst_62 {dimension_numbers = #tpu.dot_dimension_numbers<[1], [0], [0], [1], [0, 0, 1, 1], [], []>} : vector<8x8xbf16>, vector<8x128xbf16>, vector<8x128xf32> -> vector<8x128xf32>
    %142 = arith.addf %131, %141 : vector<8x128xf32>
    %cst_63 = arith.constant 9.99999996E-13 : f32
    %143 = vector.broadcast %cst_63 : f32 to vector<8x128xf32>
    %144 = arith.addf %142, %143 : vector<8x128xf32>
    %145 = math.log %144 : vector<8x128xf32>
    %c0_64 = arith.constant 0 : index
    %c0_65 = arith.constant 0 : index
    %c0_66 = arith.constant 0 : index
    %146 = vector.load %arg5[%c0_64, %c0_65, %c0_66] : memref<1x8x1xi32, #tpu.memory_space<vmem>>, vector<1x8x1xi32>
    %147 = vector.shape_cast %146 : vector<1x8x1xi32> to vector<8x1xi32>
    %148 = vector.broadcast %147 : vector<8x1xi32> to vector<8x128xi32>
    %149 = arith.cmpi eq, %110, %148 : vector<8x128xi32>
    %cst_67 = arith.constant 0.000000e+00 : f32
    %150 = vector.broadcast %cst_67 : f32 to vector<8x128xf32>
    %151 = arith.select %149, %145, %150 : vector<8x128xi1>, vector<8x128xf32>
    %cst_68 = arith.constant dense<0.000000e+00> : vector<8xf32>
    %152 = vector.multi_reduction <add>, %151, %cst_68 [1] : vector<8x128xf32> to vector<8xf32>
    %153 = vector.shape_cast %152 : vector<8xf32> to vector<8x1xf32>
    %cst_69 = arith.constant 0.000000e+00 : f32
    %154 = vector.broadcast %cst_69 : f32 to vector<8x1xf32>
    %155 = arith.subf %154, %153 : vector<8x1xf32>
    %c0_i32 = arith.constant 0 : i32
    %156 = vector.broadcast %c0_i32 : i32 to vector<8x1xi32>
    %157 = arith.cmpi eq, %147, %156 : vector<8x1xi32>
    %cst_70 = arith.constant 0.000000e+00 : f32
    %158 = vector.broadcast %cst_70 : f32 to vector<8x1xf32>
    %159 = arith.select %157, %158, %155 : vector<8x1xi1>, vector<8x1xf32>
    %c0_71 = arith.constant 0 : index
    %c0_72 = arith.constant 0 : index
    %c0_73 = arith.constant 0 : index
    %160 = vector.load %arg18[%c0_71, %c0_72, %c0_73] : memref<1x8x1xf32, #tpu.memory_space<vmem>>, vector<1x8x1xf32>
    %161 = vector.shape_cast %160 : vector<1x8x1xf32> to vector<8x1xf32>
    %162 = vector.shape_cast %159 : vector<8x1xf32> to vector<1x8x1xf32>
    tpu.vector_store %arg18[%c0_71, %c0_72, %c0_73], %162 {strides = array<i32>} : memref<1x8x1xf32, #tpu.memory_space<vmem>>, vector<1x8x1xf32>,
    return
  }
  func.func @transform_0(%arg0: i32) -> (i32, i32, i32) {
    %c0_i32 = arith.constant 0 : i32
    %c0_i32_0 = arith.constant 0 : i32
    %c0_i32_1 = arith.constant 0 : i32
    return %arg0, %c0_i32, %c0_i32_0 : i32, i32, i32
  }
  func.func @transform_1(%arg0: i32) -> (i32, i32, i32) {
    %c0_i32 = arith.constant 0 : i32
    %c0_i32_0 = arith.constant 0 : i32
    %c0_i32_1 = arith.constant 0 : i32
    return %arg0, %c0_i32, %c0_i32_0 : i32, i32, i32
  }
  func.func @transform_2(%arg0: i32) -> (i32, i32, i32) {
    %c0_i32 = arith.constant 0 : i32
    %c0_i32_0 = arith.constant 0 : i32
    %c0_i32_1 = arith.constant 0 : i32
    return %arg0, %c0_i32, %c0_i32_0 : i32, i32, i32
  }
  func.func @transform_3(%arg0: i32) -> (i32, i32, i32) {
    %c0_i32 = arith.constant 0 : i32
    %c0_i32_0 = arith.constant 0 : i32
    %c0_i32_1 = arith.constant 0 : i32
    return %arg0, %c0_i32, %c0_i32_0 : i32, i32, i32
  }
  func.func @transform_4(%arg0: i32) -> (i32, i32, i32) {
    %c0_i32 = arith.constant 0 : i32
    %c0_i32_0 = arith.constant 0 : i32
    %c0_i32_1 = arith.constant 0 : i32
    return %arg0, %c0_i32, %c0_i32_0 : i32, i32, i32
  }
  func.func @transform_5(%arg0: i32) -> (i32, i32, i32, i32) {
    %c0_i32 = arith.constant 0 : i32
    %c0_i32_0 = arith.constant 0 : i32
    %c0_i32_1 = arith.constant 0 : i32
    %c0_i32_2 = arith.constant 0 : i32
    %c0_i32_3 = arith.constant 0 : i32
    return %c0_i32, %c0_i32_0, %c0_i32_1, %c0_i32_2 : i32, i32, i32, i32
  }
  func.func @transform_6(%arg0: i32) -> (i32, i32, i32, i32) {
    %c0_i32 = arith.constant 0 : i32
    %c0_i32_0 = arith.constant 0 : i32
    %c0_i32_1 = arith.constant 0 : i32
    %c0_i32_2 = arith.constant 0 : i32
    %c0_i32_3 = arith.constant 0 : i32
    return %c0_i32, %c0_i32_0, %c0_i32_1, %c0_i32_2 : i32, i32, i32, i32
  }
  func.func @transform_7(%arg0: i32) -> (i32, i32, i32) {
    %c0_i32 = arith.constant 0 : i32
    %c0_i32_0 = arith.constant 0 : i32
    %c0_i32_1 = arith.constant 0 : i32
    %c0_i32_2 = arith.constant 0 : i32
    return %c0_i32, %c0_i32_0, %c0_i32_1 : i32, i32, i32
  }
  func.func @transform_8(%arg0: i32) -> (i32, i32) {
    %c0_i32 = arith.constant 0 : i32
    %c0_i32_0 = arith.constant 0 : i32
    %c0_i32_1 = arith.constant 0 : i32
    return %c0_i32, %c0_i32_0 : i32, i32
  }
  func.func @transform_9(%arg0: i32) -> (i32, i32) {
    %c0_i32 = arith.constant 0 : i32
    %c0_i32_0 = arith.constant 0 : i32
    %c0_i32_1 = arith.constant 0 : i32
    return %c0_i32, %c0_i32_0 : i32, i32
  }
  func.func @transform_10(%arg0: i32) -> (i32, i32) {
    %c0_i32 = arith.constant 0 : i32
    %c0_i32_0 = arith.constant 0 : i32
    %c0_i32_1 = arith.constant 0 : i32
    return %c0_i32, %c0_i32_0 : i32, i32
  }
  func.func @transform_11(%arg0: i32) -> (i32, i32) {
    %c0_i32 = arith.constant 0 : i32
    %c0_i32_0 = arith.constant 0 : i32
    %c0_i32_1 = arith.constant 0 : i32
    return %c0_i32, %c0_i32_0 : i32, i32
  }
  func.func @transform_12(%arg0: i32) -> (i32, i32) {
    %c0_i32 = arith.constant 0 : i32
    %c0_i32_0 = arith.constant 0 : i32
    %c0_i32_1 = arith.constant 0 : i32
    return %c0_i32, %c0_i32_0 : i32, i32
  }
  func.func @transform_13(%arg0: i32) -> (i32, i32) {
    %c0_i32 = arith.constant 0 : i32
    %c0_i32_0 = arith.constant 0 : i32
    %c0_i32_1 = arith.constant 0 : i32
    return %c0_i32, %c0_i32_0 : i32, i32
  }
  func.func @transform_14(%arg0: i32) -> (i32, i32) {
    %c0_i32 = arith.constant 0 : i32
    %c0_i32_0 = arith.constant 0 : i32
    %c0_i32_1 = arith.constant 0 : i32
    return %c0_i32, %c0_i32_0 : i32, i32
  }
  func.func @transform_15(%arg0: i32) -> (i32, i32) {
    %c0_i32 = arith.constant 0 : i32
    %c0_i32_0 = arith.constant 0 : i32
    %c0_i32_1 = arith.constant 0 : i32
    return %c0_i32, %c0_i32_0 : i32, i32
  }
  func.func @transform_16(%arg0: i32) -> (i32, i32) {
    %c0_i32 = arith.constant 0 : i32
    %c0_i32_0 = arith.constant 0 : i32
    %c0_i32_1 = arith.constant 0 : i32
    return %c0_i32, %c0_i32_0 : i32, i32
  }
  func.func @transform_17(%arg0: i32) -> (i32, i32, i32) {
    %c0_i32 = arith.constant 0 : i32
    %c0_i32_0 = arith.constant 0 : i32
    %c0_i32_1 = arith.constant 0 : i32
    return %arg0, %c0_i32, %c0_i32_0 : i32, i32, i32
  }
}

</mosaic_0001>

<bundles_post_ra>
// kernel: decode_layer_forward.3
= control target key start
LH: loop header
LB: loop body
LE: loop exit
PB: predicated region body
PF: predicated region fallthrough
CT: control target
= control target key end

     0   :  { %s1726_s24 = smov 0   ;;  %s1900_s0 = inlined_call_operand.vmem [shape: f32[2,8,32], index: 0, kind: input, shape index: {}]   ;;  %s1901_s1 = inlined_call_operand.vmem [shape: f32[2,8,32], index: 1, kind: input, shape index: {}]   ;;  %s1902_s2 = inlined_call_operand.vmem [shape: f32[2,1,8], index: 2, kind: input, shape index: {}]   ;;  %s1903_s3 = inlined_call_operand.vmem [shape: s32[2,8,1], index: 3, kind: input, shape index: {}]   ;;  %s1904_s4 = inlined_call_operand.vmem [shape: s32[2,8,1], index: 4, kind: input, shape index: {}]   ;;  %s1905_s5 = inlined_call_operand.vmem [shape: bf16[3,1,32,32], index: 5, kind: input, shape index: {}]   ;;  %s1906_s6 = inlined_call_operand.vmem [shape: f32[3,1,1,32], index: 6, kind: input, shape index: {}]   ;;  %s1907_s7 = inlined_call_operand.vmem [shape: bf16[1,32,32], index: 7, kind: input, shape index: {}]   ;;  %s1908_s8 = inlined_call_operand.vmem [shape: f32[1,32], index: 8, kind: input, shape index: {}]   ;;  %s1909_s9 = inlined_call_operand.vmem [shape: f32[1,32], index: 9, kind: input, shape index: {}]   ;;  %s1910_s10 = inlined_call_operand.vmem [shape: f32[1,32], index: 10, kind: input, shape index: {}]   ;;  %s1911_s11 = inlined_call_operand.vmem [shape: bf16[32,32], index: 11, kind: input, shape index: {}]   ;;  %s1912_s12 = inlined_call_operand.vmem [shape: f32[1,32], index: 12, kind: input, shape index: {}]   ;;  %s1913_s13 = inlined_call_operand.vmem [shape: bf16[32,128], index: 13, kind: input, shape index: {}]   ;;  %s1914_s14 = inlined_call_operand.vmem [shape: f32[1,128], index: 14, kind: input, shape index: {}]   ;;  %s1915_s15 = inlined_call_operand.vmem [shape: bf16[32,2], index: 15, kind: input, shape index: {}]   ;;  %s1916_s16 = inlined_call_operand.vmem [shape: f32[1,2], index: 16, kind: input, shape index: {}]   ;;  %s1917_s17 = inlined_call_operand.vmem [shape: f32[2,8,1], index: 17, kind: output, shape index: {}]  }
   0x1   :  { %1918 = sst [smem:[#allocation2_spill]] %s1900_s0 }
   0x2   :  { %1919 = sst [smem:[#allocation3_spill]] %s1901_s1 }
   0x3 LB: > { %s1429_s25 = sadd.s32 4294967295, %s1630_s24   ;;  %p1433_p0 = scmp.ge.s32.totalorder %s1630_s24, 1  ;;  %s1630_s24 = sphi %s1726_s24, %s27_s24  }
   0x4   : > { %p521_p1 = scmp.lt.s32.totalorder %s1630_s24, 3 }
   0x6   : > { %p522_p2 = pnand %p1433_p0, %p521_p1 }
   0x7   : > { %p586_p3 = scmp.lt.s32.totalorder (!%p522_p2), %s1429_s25, 1  ;;  %s1920_s22 = sld [smem:[#allocation3_spill]] (!%p522_p2) }
   0x8   : > { %525 = sbr.rel (%p522_p2) target bundleno = 2667 (0xa6b), region = 88  ;;  %s1921_s28 = sld [smem:[#allocation2_spill]] (!%p522_p2) }
   0xd   : > { %v1592_v0 = vld [vmem:[%s1905_s5 + $0x18] sm:$0xff]   ;;  %v1632_v1 = vmov 0.0   ;;  %v1593_v2 = vld [vmem:[%s1905_s5 + $0x8] sm:$0xff]   ;;  %v1594_v3 = vld [vmem:[%s1905_s5 + $0x10] sm:$0xff]   ;;  %vm1633_vm0 = vmmov 0   ;;  %s1923_s25 = smov (!%p586_p3, %s1429_s25), 1 }
   0xe   : > { %1511 = vmatprep.subr.bf16.mxu1 %v1632_v1  ;;  %1503 = vmatprep.subr.bf16.mxu0 %v1632_v1  ;;  %v1595_v4 = vld [vmem:[%s1905_s5] sm:$0xff]   ;;  %s1757_s1 = sshll.u32 %s1923_s25, 3  ;;  %vm654_vm1 = vcmask 261120   ;;  %v1596_v25 = vld [vmem:[%s1905_s5 + $0x28] sm:$0xff]   ;;  %vm872_vm2 = vcmask 64512   ;;  %vm889_vm3 = vcmask 1043456  }
   0xf   : > { %1512 = vmatpush3.bf16.msra.mxu1 %v1592_v0  ;;  %1515 = vmatprep.mubr.msk.bf16.mxu1 %vm1633_vm0, %v1632_v1  ;;  %s593_s23 = scalar_lea.vmem %s1920_s22, %s1757_s1  ;;  %s589_s29 = scalar_lea.vmem %s1921_s28, %s1757_s1  ;;  %v1443_v9 = vld [vmem:[%s1906_s6 + $0x1] ss:$0 sm:$0xff]  ;;  %v1439_v10 = vld [vmem:[%s1906_s6] ss:$0 sm:$0xff]  ;;  %v1447_v39 = vld [vmem:[%s1906_s6 + $0x2] ss:$0 sm:$0xff] }
  0x10   : > { %1504 = vmatpush3.bf16.msra.mxu0 %v1593_v2  ;;  %1513 = vmatprep.subr.bf16.mxu1 %v1632_v1  ;;  %v611_v5 = vld [vmem:[%s593_s23] sm:$0xff]  ;;  %s596_s28 = scalar_lea.vmem %s1902_s2, %s1923_s25  ;;  %v1598_v47 = vld [vmem:[%s1907_s7 + $0x8] sm:$0xff]   ;;  %vm1161_vm4 = vcmask 15360   ;;  %s600_s18 = scalar_lea.vmem %s1903_s3, %s1757_s1  ;;  %vm1329_vm9 = vcmask 7168  }
  0x11   : > { %1505 = vmatprep.subr.bf16.mxu0 %v1632_v1  ;;  %1507 = vmatprep.mubr.msk.bf16.mxu0 %vm1633_vm0, %v1632_v1  ;;  %v1768_v6 = vld [vmem:[%s589_s29] sm:$0xff]  ;;  %v635_v7 = vpack.c.bf16 %v611_v5, %v611_v5  ;;  %s604_s23 = scalar_lea.vmem %s1904_s4, %s1757_s1 }
  0x12   : > { %v634_v8 = vpack.c.bf16 %v1768_v6, %v1768_v6  ;;  %v1597_v26 = vld [vmem:[%s1905_s5 + $0x20] sm:$0xff]  }
  0x13   : > { %1514 = vmatpush3.bf16.msra.mxu1 %v1594_v3  ;;  %v1451_v27 = vld [vmem:[%s596_s28] ss:$0 sm:$0xff]  ;;  %s608_s28 = scalar_lea.vmem %s1917_s17, %s1757_s1 }
  0x14   : > { %1506 = vmatpush3.bf16.msra.mxu0 %v1595_v4  ;;  %1527 = vmatprep.subr.bf16.mxu1 %v1632_v1  ;;  %v1599_v52 = vld [vmem:[%s1907_s7] sm:$0xff]  }
  0x15   : > { %1519 = vmatprep.subr.bf16.mxu0 %v1632_v1  ;;  %v1454_v58 = vld [vmem:[%s1908_s8] ss:$0 sm:$0xff] }
  0x16   : > { %1516 = vmatmul.mubr.msk.bf16.vlgmr.msra.gmra.mxu1 %vm654_vm1, %v635_v7 }
  0x17   : > { %1508 = vmatmul.mubr.msk.bf16.vlgmr.msra.gmra.mxu0 %vm654_vm1, %v634_v8  ;;  %1529 = vmatprep.mubr.msk.bf16.mxu1 %vm1633_vm0, %v1632_v1 }
  0x18   : > { %1523 = vmatprep.mubr.msk.bf16.mxu0 %vm1633_vm0, %v1632_v1  ;;  %1520 = vmatpush3.bf16.msra.mxu0 %v1596_v25 }
  0x19   : > { %1521 = vmatprep.subr.bf16.mxu0 %v1632_v1 }
  0x1c   : > { %1522 = vmatpush3.bf16.msra.mxu0 %v1597_v26 }
  0x1d   : > { %1533 = vmatprep.subr.bf16.mxu0 %v1632_v1 }
  0x1f   : > { %1524 = vmatmul.mubr.msk.bf16.vlgmr.msra.gmra.mxu0 %vm654_vm1, %v635_v7 }
  0x20   : > { %1535 = vmatprep.mubr.msk.bf16.mxu0 %vm1633_vm0, %v1632_v1 }
  0xd6   : > { %v754_v11 = vpop.f32.mrf.mxu1 }
  0xd7   : > { %v692_v12 = vpop.f32.mrf.mxu0  ;;  %v755_v13 = vadd.f32 %v1443_v9, %v754_v11  ;;  %v1600_v9 = vld [vmem:[%s1911_s11 + $0x8] sm:$0xff]  }
  0xd8   : > { %v693_v14 = vadd.f32 %v1439_v10, %v692_v12  ;;  %v1517_v15 = vpop.f32.mrf.mxu1 }
  0xd9   : > { %v1509_v16 = vpop.f32.mrf.mxu0  ;;  %v819_v17 = vpack.c.bf16 %v755_v13, %v755_v13 }
  0xda   : > { %v757_v18 = vpop.f32.mrf.mxu1  ;;  %v698_v21 = vmul.f32 0.17677669, %v693_v14  ;;  %v1458_v14 = vld [vmem:[%s1909_s9] ss:$0 sm:$0xff] }
  0xdb   : > { %v695_v19 = vpop.f32.mrf.mxu0  ;;  %v830_v20 = vsel %vm654_vm1, %v819_v17, 0  ;;  %v1459_v16 = vld [vmem:[%s1910_s10] ss:$0 sm:$0xff] }
  0xdc   : > { %v1518_v22 = vpop.f32.mrf.mxu1  ;;  %1528 = vmatpush3.bf16.xpose.msra.mxu1 %v830_v20  ;;  %v818_v24 = vpack.c.bf16 %v698_v21, %v698_v21  ;;  %v1602_v20 = vld [vmem:[%s1915_s15 + $0x8] sm:$0xff]  }
  0xdd   : > { %v1510_v23 = vpop.f32.mrf.mxu0  ;;  %1539 = vmatprep.subr.bf16.mxu1 %v1632_v1  ;;  %v1603_v21 = vld [vmem:[%s1913_s13 + $0x8] sm:$0xff]   ;;  %v1604_v22 = vld [vmem:[%s1915_s15] sm:$0xff]  }
  0xde   : > { %v1605_v23 = vld [vmem:[%s1913_s13] sm:$0xff]  }
  0xdf   : > { %v812_v40 = vpop.f32.mrf.mxu0 }
  0xe0   : > { %v813_v41 = vadd.f32 %v1447_v39, %v812_v40 }
  0xe1   : > { %v1525_v42 = vpop.f32.mrf.mxu0 }
  0xe2   : > { %v885_v43 = vpack.c.bf16 %v813_v41, %v813_v41 }
  0xe3   : > { %1530 = vmatmul.mubr.msk.bf16.vlgmr.msra.gmra.mxu1 %vm654_vm1, %v818_v24  ;;  %v815_v44 = vpop.f32.mrf.mxu0  ;;  %v1460_v24 = vld [vmem:[%s1912_s12] ss:$0 sm:$0xff] }
  0xe4   : > { %1543 = vmatprep.mubr.msk.bf16.mxu1 %vm1633_vm0, %v1632_v1  ;;  %v891_v45 = vsel %vm889_vm3, %v885_v43, 0  ;;  %1540 = vmatpush3.bf16.msra.mxu1 %v1598_v47 }
  0xe5   : > { %v1526_v46 = vpop.f32.mrf.mxu0  ;;  %1534 = vmatpush3.bf16.msra.mxu0 %v891_v45  ;;  %1541 = vmatprep.subr.bf16.mxu1 %v1632_v1 }
  0xe6   : > { %1547 = vmatprep.subr.bf16.mxu0 %v1632_v1 }
  0xe8   : > { %1542 = vmatpush3.bf16.msra.mxu1 %v1599_v52  ;;  %v1173_v52 = vlaneseq }
  0xe9   : > { %1555 = vmatprep.subr.bf16.mxu1 %v1632_v1 }
 0x1a3   : > { %v866_v28 = vpop.f32.mrf.mxu1 }
 0x1a4   : > { %v867_v29 = vadd.f32 %v1451_v27, %v866_v28 }
 0x1a5   : > { %v1531_v30 = vpop.f32.mrf.mxu1 }
 0x1a6   : > { %v873_v31 = vsel %vm872_vm2, %v867_v29, -inf }
 0x1a7   : > { %874 = vmax.xlane.f32.xlu0 %v873_v31  ;;  %v869_v32 = vpop.f32.mrf.mxu1 }
 0x1a8   : > { %v1464_v32 = vld [vmem:[%s1916_s16] ss:$0 sm:$0xff] }
 0x1a9   : > { %v1532_v33 = vpop.f32.mrf.mxu1 }
 0x230   : > { %v875_v34 = vpop.xlane.xlu0 %874 }
 0x231   : > { %v876_v35 = vsub.f32 %v867_v29, %v875_v34 }
 0x233   : > { %v877_v36 = vmul.f32 1.442695, %v876_v35 }
 0x235   : > { %1606 = vpow2.f32 %v877_v36 }
 0x242   : > { %v1607_v37 = vpop.eup %1606 }
 0x243   : > { %v879_v38 = vsel %vm872_vm2, %v1607_v37, 0.0 }
 0x244   : > { %880 = vadd.xlane.f32.xlu0 %v879_v38 }
 0x2cd   : > { %v881_v48 = vpop.xlane.xlu0 %880 }
 0x2ce   : > { %1608 = vrcp.f32 %v881_v48  ;;  %v1634_v48 = vmov 0  }
 0x2cf   : > { %1589 = vset.pattern.permute.xlu0 %v1634_v48 }
 0x2db   : > { %v1609_v49 = vpop.eup %1608 }
 0x2dc   : > { %v1816_v50 = vmul.f32 %v1609_v49, %v1607_v37  ;;  %v613_v49 = vld [vmem:[%s600_s18] sm:$0xff] }
 0x2de   : > { %v884_v51 = vpack.c.bf16 %v1816_v50, %v1816_v50 }
 0x2e0   : > { %1536 = vmatmul.mubr.msk.bf16.vlgmr.msra.gmra.mxu0 %vm872_vm2, %v884_v51  ;;  %v1635_v51 = vmov 1  }
 0x2e1   : > { %1551 = vmatprep.mubr.msk.bf16.mxu0 %vm1633_vm0, %v1632_v1  ;;  %1548 = vmatpush3.bf16.msra.mxu0 %v1600_v9 }
 0x2e2   : > { %1549 = vmatprep.subr.bf16.mxu0 %v1632_v1  ;;  %1590 = vset.pattern.permute.xlu1 %v1635_v51 }
 0x3a0   : > { %v927_v53 = vpop.f32.mrf.mxu0 }
 0x3a1   : > { %v933_v54 = vpack.c.bf16 %v927_v53, %v927_v53 }
 0x3a2   : > { %v1537_v55 = vpop.f32.mrf.mxu0 }
 0x3a3   : > { %1544 = vmatmul.mubr.msk.bf16.vlgmr.msra.gmra.mxu1 %vm654_vm1, %v933_v54  ;;  %v1174_v55 = vand.u32 127, %v1173_v52 }
 0x3a4   : > { %v930_v56 = vpop.f32.mrf.mxu0  ;;  %1559 = vmatprep.mubr.msk.bf16.mxu1 %vm1633_vm0, %v1632_v1  ;;  %1556 = vmatpush3.bf16.msra.mxu1 %v1602_v20 }
 0x3a5   : > { %1557 = vmatprep.subr.bf16.mxu1 %v1632_v1  ;;  %vm1238_vm6 = vcmp.ge.s32.totalorder %v1174_v55, 20 }
 0x3a6   : > { %v1538_v57 = vpop.f32.mrf.mxu0 }
 0x3a8   : > { %1558 = vmatpush3.bf16.msra.mxu1 %v1604_v22 }
 0x3a9   : > { %1571 = vmatprep.subr.bf16.mxu1 %v1632_v1 }
 0x463   : > { %v989_v59 = vpop.f32.mrf.mxu1 }
 0x464   : > { %v990_v60 = vadd.f32 %v1454_v58, %v989_v59 }
 0x465   : > { %v1545_v61 = vpop.f32.mrf.mxu1 }
 0x466   : > { %v995_v62 = vadd.f32 %v990_v60, %v1768_v6  ;;  %v1601_v6 = vld [vmem:[%s1911_s11] sm:$0xff]  }
 0x467   : > { %v992_v63 = vpop.f32.mrf.mxu1  ;;  %1550 = vmatpush3.bf16.msra.mxu0 %v1601_v6  ;;  %v1468_v61 = vld [vmem:[%s1914_s14] ss:$0 sm:$0xff] }
 0x468   : > { %v998_v0 = vsel %vm654_vm1, %v995_v62, 0.0  ;;  %1563 = vmatprep.subr.bf16.mxu0 %v1632_v1 }
 0x469   : > { %999 = vadd.xlane.f32.xlu1 %v998_v0  ;;  %v1546_v2 = vpop.f32.mrf.mxu1 }
 0x4f2   : > { %v1000_v3 = vpop.xlane.xlu1 %999 }
 0x4f3   : > { %v1002_v4 = vmul.f32 0.03125, %v1000_v3 }
 0x4f5   : > { %v1003_v5 = vsub.f32 %v995_v62, %v1002_v4 }
 0x4f7   : > { %v1004_v7 = vmul.f32 %v1003_v5, %v1003_v5 }
 0x4f9   : > { %v1005_v8 = vsel %vm654_vm1, %v1004_v7, 0.0 }
 0x4fa   : > { %1006 = vadd.xlane.f32.xlu1 %v1005_v8 }
 0x583   : > { %v1007_v10 = vpop.xlane.xlu1 %1006 }
 0x584   : > { %v1008_v11 = vmul.f32 0.03125, %v1007_v10 }
 0x586   : > { %v1009_v12 = vadd.f32 1e-05, %v1008_v11 }
 0x588   : > { %1610 = vrsqrt.f32 %v1009_v12 }
 0x595   : > { %v1611_v13 = vpop.eup %1610 }
 0x596   : > { %v1011_v15 = vmul.f32 %v1611_v13, %v1003_v5 }
 0x598   : > { %v1018_v17 = vmul.f32 %v1458_v14, %v1011_v15 }
 0x59a   : > { %v1025_v18 = vadd.f32 %v1459_v16, %v1018_v17 }
 0x59c   : > { %v1030_v19 = vpack.c.bf16 %v1025_v18, %v1025_v18 }
 0x59e   : > { %1552 = vmatmul.mubr.msk.bf16.vlgmr.msra.gmra.mxu0 %vm654_vm1, %v1030_v19 }
 0x59f   : > { %1567 = vmatprep.mubr.msk.bf16.mxu0 %vm1633_vm0, %v1632_v1  ;;  %1564 = vmatpush3.bf16.msra.mxu0 %v1603_v21 }
 0x5a0   : > { %1565 = vmatprep.subr.bf16.mxu0 %v1632_v1 }
 0x5a3   : > { %1566 = vmatpush3.bf16.msra.mxu0 %v1605_v23 }
 0x65e   : > { %v1087_v25 = vpop.f32.mrf.mxu0 }
 0x65f   : > { %v1088_v26 = vadd.f32 %v1460_v24, %v1087_v25 }
 0x660   : > { %v1553_v27 = vpop.f32.mrf.mxu0 }
 0x661   : > { %1612 = vtanh.f32 %v1088_v26 }
 0x662   : > { %v1090_v28 = vpop.f32.mrf.mxu0 }
 0x664   : > { %v1554_v29 = vpop.f32.mrf.mxu0 }
 0x66e   : > { %v1613_v30 = vpop.eup %1612 }
 0x66f   : > { %v1098_v31 = vpack.c.bf16 %v1613_v30, %v1613_v30 }
 0x671   : > { %1560 = vmatmul.mubr.msk.bf16.vlgmr.msra.gmra.mxu1 %vm654_vm1, %v1098_v31  ;;  %1568 = vmatmul.mubr.msk.bf16.vlgmr.msra.gmra.mxu0 %vm654_vm1, %v1098_v31 }
 0x672   : > { %1573 = vmatprep.mubr.msk.bf16.mxu1 %vm1633_vm0, %v1632_v1 }
 0x731   : > { %v1155_v33 = vpop.f32.mrf.mxu1  ;;  %v1232_v34 = vpop.f32.mrf.mxu0 }
 0x732   : > { %v1156_v35 = vadd.f32 %v1464_v32, %v1155_v33  ;;  %v1233_v62 = vadd.f32 %v1468_v61, %v1232_v34 }
 0x733   : > { %v1561_v36 = vpop.f32.mrf.mxu1  ;;  %v1569_v37 = vpop.f32.mrf.mxu0 }
 0x734   : > { %v1162_v38 = vsel %vm1161_vm4, %v1156_v35, -inf  ;;  %v1239_v63 = vsel %vm1238_vm6, -1e+30, %v1233_v62 }
 0x735   : > { %1163 = vmax.xlane.f32.xlu0 %v1162_v38  ;;  %v1158_v39 = vpop.f32.mrf.mxu1  ;;  %v1235_v40 = vpop.f32.mrf.mxu0 }
 0x737   : > { %v1562_v41 = vpop.f32.mrf.mxu1  ;;  %v1570_v42 = vpop.f32.mrf.mxu0 }
 0x74b   : > { %1256 = vperm.xlu0 %1589, %v613_v49  }
 0x7be   : > { %v1164_v43 = vpop.xlane.xlu0 %1163 }
 0x7bf   : > { %v1165_v44 = vsub.f32 %v1156_v35, %v1164_v43 }
 0x7c1   : > { %v1166_v45 = vmul.f32 1.442695, %v1165_v44 }
 0x7c3   : > { %1614 = vpow2.f32 %v1166_v45 }
 0x7c6   : > { %v1257_v54 = vpop.permute.xlu0 %1256 }
 0x7c7   : > { %vm1258_vm5 = vcmp.eq.s32.totalorder %v1174_v55, %v1257_v54 }
 0x7c8   : > { %v1472_v56 = vsel %vm1258_vm5, 1.0, %v1632_v1  ;;  %v1318_v1 = vld [vmem:[%s604_s23] sm:$0xff] }
 0x7c9   : > { %v1261_v57 = vpack.c.bf16 %v1472_v56, %v1472_v56  ;;  %vm1327_vm8 = vcmp.eq.s32.totalorder %v1318_v1, 0 }
 0x7cb   : > { %v1272_v58 = vsel %vm889_vm3, %v1261_v57, 0 }
 0x7cc   : > { %1572 = vmatpush3.bf16.msra.mxu1 %v1272_v58 }
 0x7d0   : > { %v1615_v46 = vpop.eup %1614 }
 0x7d1   : > { %v1168_v47 = vsel %vm1161_vm4, %v1615_v46, 0.0 }
 0x7d2   : > { %1169 = vadd.xlane.f32.xlu1 %v1168_v47 }
 0x85b   : > { %v1170_v53 = vpop.xlane.xlu1 %1169 }
 0x85c   : > { %1616 = vrcp.f32 %v1170_v53 }
 0x869   : > { %v1617_v59 = vpop.eup %1616 }
 0x86a   : > { %v1172_v60 = vmul.f32 %v1617_v59, %v1615_v46 }
 0x86c   : > { %1263 = vperm.xlu1 %1590, %v1172_v60  }
 0x870   : > { %1591 = vset.pattern.permute.xlu1 %v1634_v48 }
 0x890   : > { %1240 = vmax.xlane.f32.xlu1 %v1239_v63 }
 0x8a1   : > { %1251 = vperm.xlu1 %1591, %v1172_v60  }
 0x8a5   : > { %1320 = vperm.xlu1 %1591, %v1318_v1  }
 0x8e7   : > { %v1264_v0 = vpop.permute.xlu1 %1263 }
 0x8e8   : > { %v1266_v2 = vmul.f32 %v1264_v0, %v1816_v50 }
 0x8ea   : > { %v1267_v3 = vpack.c.bf16 %v1266_v2, %v1266_v2 }
 0x8ec   : > { %1574 = vmatmul.mubr.msk.bf16.vlgmr.msra.gmra.mxu1 %vm872_vm2, %v1267_v3 }
 0x919   : > { %v1241_v4 = vpop.xlane.xlu1 %1240 }
 0x91a   : > { %v1242_v5 = vsub.f32 %v1239_v63, %v1241_v4 }
 0x91c   : > { %v1243_v7 = vmul.f32 1.442695, %v1242_v5 }
 0x91d   : > { %v1252_v15 = vpop.permute.xlu1 %1251 }
 0x91e   : > { %1618 = vpow2.f32 %v1243_v7 }
 0x921   : > { %v1321_v18 = vpop.permute.xlu1 %1320 }
 0x922   : > { %vm1322_vm7 = vcmp.eq.s32.totalorder %v1174_v55, %v1321_v18 }
 0x92b   : > { %v1619_v8 = vpop.eup %1618 }
 0x92c   : > { %1245 = vadd.xlane.f32.xlu0 %v1619_v8 }
 0x9ac   : > { %v1308_v9 = vpop.f32.mrf.mxu1 }
 0x9ae   : > { %v1575_v6 = vpop.f32.mrf.mxu1 }
 0x9b0   : > { %v1311_v10 = vpop.f32.mrf.mxu1 }
 0x9b2   : > { %v1576_v11 = vpop.f32.mrf.mxu1 }
 0x9b5   : > { %v1246_v12 = vpop.xlane.xlu0 %1245 }
 0x9b6   : > { %1620 = vrcp.f32 %v1246_v12 }
 0x9c3   : > { %v1621_v13 = vpop.eup %1620 }
 0x9c4   : > { %v1248_v14 = vmul.f32 %v1621_v13, %v1619_v8 }
 0x9c6   : > { %v1254_v50 = vmul.f32 %v1252_v15, %v1248_v14 }
 0x9c8   : > { %v1314_v16 = vadd.f32 %v1308_v9, %v1254_v50 }
 0x9ca   : > { %v1315_v17 = vadd.f32 1e-12, %v1314_v16 }
 0x9cc   : > { %1622 = vlog2.f32 %v1315_v17 }
 0x9d9   : > { %v1623_v19 = vpop.eup %1622 }
 0x9da   : > { %v1317_v20 = vmul.f32 0.6931472, %v1623_v19 }
 0x9dc   : > { %v1323_v21 = vsel %vm1322_vm7, %v1317_v20, 0.0 }
 0x9dd   : > { %1324 = vadd.xlane.f32.xlu1 %v1323_v21 }
 0xa66   : > { %v1325_v22 = vpop.xlane.xlu1 %1324 }
 0xa67   : > { %v1326_v23 = vsub.f32 0.0, %v1325_v22 }
 0xa69   : > { %v1328_v24 = vsel %vm1327_vm8, 0.0, %v1326_v23 }
 0xa6a   : > { %1330 = vst.msk [vmem:[%s608_s28] sm:$0xff] %vm1329_vm9, %v1328_v24 }
 0xa6b PF: > { %s27_s24 = sadd.s32 1, %s1630_s24  }
 0xa6c   : > { %p24_p4 = scmp.ge.s32.totalorder %s27_s24, 4  }
 0xa6e   :  { %26 = sbr.rel (!%p24_p4) target bundleno = 3 (0x3), region = 130 }

// kernel: decode_layer_forward.2
= control target key start
LH: loop header
LB: loop body
LE: loop exit
PB: predicated region body
PF: predicated region fallthrough
CT: control target
= control target key end

     0   :  { %s3502_s30 = smov 0   ;;  %s3504_s20 = smov 0   ;;  %s3907_s0 = inlined_call_operand.vmem [shape: f32[2,8,32], index: 0, kind: input, shape index: {}]   ;;  %s3908_s1 = inlined_call_operand.vmem [shape: f32[2,8,32], index: 1, kind: input, shape index: {}]   ;;  %s3909_s2 = inlined_call_operand.vmem [shape: f32[2,8,32], index: 2, kind: input, shape index: {}]   ;;  %s3910_s3 = inlined_call_operand.vmem [shape: f32[2,8,8], index: 3, kind: input, shape index: {}]   ;;  %s3911_s4 = inlined_call_operand.vmem [shape: f32[2,1,8], index: 4, kind: input, shape index: {}]   ;;  %s3912_s5 = inlined_call_operand.vmem [shape: bf16[2,3,2,32,16], index: 5, kind: input, shape index: {}]   ;;  %s3913_s6 = inlined_call_operand.vmem [shape: f32[2,3,2,1,16], index: 6, kind: input, shape index: {}]   ;;  %s3914_s7 = inlined_call_operand.vmem [shape: bf16[2,2,16,32], index: 7, kind: input, shape index: {}]   ;;  %s3915_s8 = inlined_call_operand.vmem [shape: f32[2,1,32], index: 8, kind: input, shape index: {}]   ;;  %s3916_s9 = inlined_call_operand.vmem [shape: bf16[2,3,2,32,16], index: 9, kind: input, shape index: {}]   ;;  %s3917_s10 = inlined_call_operand.vmem [shape: f32[2,3,2,1,16], index: 10, kind: input, shape index: {}]   ;;  %s3918_s11 = inlined_call_operand.vmem [shape: bf16[2,2,16,32], index: 11, kind: input, shape index: {}]   ;;  %s3919_s12 = inlined_call_operand.vmem [shape: f32[2,1,32], index: 12, kind: input, shape index: {}]   ;;  %s3920_s13 = inlined_call_operand.vmem [shape: bf16[2,32,64], index: 13, kind: input, shape index: {}]   ;;  %s3921_s14 = inlined_call_operand.vmem [shape: f32[2,1,64], index: 14, kind: input, shape index: {}]   ;;  %s3922_s15 = inlined_call_operand.vmem [shape: bf16[2,64,32], index: 15, kind: input, shape index: {}]   ;;  %s3923_s16 = inlined_call_operand.vmem [shape: f32[2,1,32], index: 16, kind: input, shape index: {}]   ;;  %s3924_s17 = inlined_call_operand.vmem [shape: f32[2,3,1,32], index: 17, kind: input, shape index: {}]   ;;  %s3925_s18 = inlined_call_operand.vmem [shape: f32[2,3,1,32], index: 18, kind: input, shape index: {}]   ;;  %s3926_s19 = inlined_call_operand.vmem [shape: f32[2,8,32], index: 19, kind: output, shape index: {}]  }
   0x1   :  { %3933 = sst [smem:[#allocation11_spill]] %s3907_s0  ;;  %s3500_s0 = smov 0  }
   0x2   :  { %3934 = sst [smem:[#allocation12_spill]] %s3908_s1  ;;  %s3506_s21 = smov 0  }
   0x3   :  { %3935 = sst [smem:[#allocation13_spill]] %s3909_s2  ;;  %s3508_s1 = smov 0  }
   0x4   :  { %3936 = sst [smem:[#allocation14_spill]] %s3910_s3 }
   0x5   :  { %3937 = sst [smem:[#allocation15_spill]] %s3911_s4 }
   0x6   :  { %3938 = sst [smem:[#allocation16_spill]] %s3912_s5 }
   0x7   :  { %3939 = sst [smem:[#allocation17_spill]] %s3913_s6 }
   0x8   :  { %3940 = sst [smem:[#allocation18_spill]] %s3914_s7 }
   0x9   :  { %3941 = sst [smem:[#allocation19_spill]] %s3916_s9 }
   0xa   :  { %3942 = sst [smem:[#allocation20_spill]] %s3917_s10 }
   0xb   :  { %3943 = sst [smem:[#allocation21_spill]] %s3918_s11 }
   0xc   :  { %3944 = sst [smem:[#allocation22_spill]] %s3919_s12 }
   0xd   :  { %3945 = sst [smem:[#allocation23_spill]] %s3920_s13 }
   0xe   :  { %3946 = sst [smem:[#allocation24_spill]] %s3921_s14 }
   0xf   :  { %3947 = sst [smem:[#allocation25_spill]] %s3922_s15 }
  0x10   :  { %3948 = sst [smem:[#allocation26_spill]] %s3923_s16 }
  0x11   :  { %3949 = sst [smem:[#allocation27_spill]] %s3924_s17 }
  0x12   :  { %3950 = sst [smem:[#allocation28_spill]] %s3925_s18 }
  0x13   :  { %3951 = sst [smem:[#allocation29_spill]] %s3926_s19 }
  0x14 LB: > { %3952 = sst [smem:[#allocation3_spill]] %s3380_s0  ;;  %s38_s22 = sadd.s32 1, %s3388_s20  ;;  %s3396_s1 = sphi %s3508_s1, %s29_s1   ;;  %s3392_s21 = sphi %s3506_s21, %s4002_s21   ;;  %s3388_s20 = sphi %s3504_s20, %s4001_s20   ;;  %s3384_s30 = sphi %s3502_s30, %s4000_s30   ;;  %s3380_s0 = sphi %s3500_s0, %s3999_s0  }
  0x15   : > { %3953 = sst [smem:[#allocation4_spill]] %s3388_s20  ;;  %s41_s2 = sadd.s32 1, %s3392_s21 }
  0x16   : > { %3954 = sst [smem:[#allocation5_spill]] %s3392_s21  ;;  %p39_p0 = scmp.ge.s32.totalorder %s38_s22, 2 }
  0x17   : > { %3955 = sst [smem:[#allocation6_spill]] %s3396_s1  ;;  %p2894_p1 = scmp.ge.s32.totalorder %s3396_s1, 1 }
  0x18   : > { %p711_p2 = scmp.lt.s32.totalorder %s3396_s1, 5  ;;  %s4004_s22 = smov (%p39_p0, %s38_s22), 0 }
  0x19   : > { %3956 = sst [smem:[#allocation7_spill]] %s4004_s22  ;;  %s4006_s2 = smov (!%p39_p0, %s41_s2), %s3392_s21 }
  0x1a   : > { %p712_p3 = pnand %p2894_p1, %p711_p2  ;;  %p43_p4 = scmp.ge.s32.totalorder %s4006_s2, 2 }
  0x1c   : > { %s4008_s2 = smov (%p43_p4, %s4006_s2), 0  ;;  %715 = sbr.rel (%p712_p3) target bundleno = 3643 (0xe3b), region = 96 }
  0x1d   : > { %3957 = sst [smem:[#allocation8_spill]] %s4008_s2 }
  0x21   : > { %p838_p5 = scmp.lt.s32.totalorder %s3384_s30, 1  ;;  %p857_p6 = scmp.lt.s32.totalorder %s3380_s0, 1 }
  0x22   : > { %s3959_s29 = sld [smem:[#allocation11_spill]] }
  0x23   : > { %s4010_s30 = smov (!%p838_p5, %s3384_s30), 1  ;;  %s3963_s7 = sld [smem:[#allocation18_spill]] }
  0x24   : > { %s3536_s23 = scalar_select %p857_p6, %s3380_s0, 1 }
  0x25   : > { %s3539_s24 = sshll.u32 %s4010_s30, 3  ;;  %s3964_s5 = sld [smem:[#allocation16_spill]] }
  0x26   : > { %s3257_s26 = smul.u32 96, %s3536_s23  ;;  %s2997_s4 = sshll.u32 %s3536_s23, 4 }
  0x27   : > { %s3258_s27 = smul.u32 6, %s3536_s23  ;;  %s3965_s6 = sld [smem:[#allocation17_spill]] }
  0x28   : > { %s841_s2 = scalar_lea.vmem %s3959_s29, %s3539_s24  ;;  %s3966_s9 = sld [smem:[#allocation19_spill]] }
  0x29   : > { %s3567_s21 = scalar_lea.vmem %s3963_s7, %s2997_s4  ;;  %s3967_s10 = sld [smem:[#allocation20_spill]] }
  0x2a   : > { %s3968_s11 = sld [smem:[#allocation21_spill]]  ;;  %s3259_s0 = smul.u32 3, %s3536_s23 }
  0x2b   : > { %s3572_s18 = scalar_lea.vmem %s3964_s5, %s3257_s26  ;;  %s3971_s13 = sld [smem:[#allocation23_spill]] }
  0x2c   : > { %s3978_s14 = sld [smem:[#allocation28_spill]] }
  0x2d   : > { %s3581_s25 = scalar_lea.vmem %s3965_s6, %s3258_s27  ;;  %s3976_s6 = sld [smem:[#allocation29_spill]] }
  0x2e   : > { %s3586_s28 = scalar_lea.vmem %s3966_s9, %s3257_s26 }
  0x2f   : > { %s3591_s20 = scalar_lea.vmem %s3967_s10, %s3258_s27  ;;  %s3000_s27 = sshll.u32 %s3536_s23, 5 }
  0x30   : > { %s3596_s17 = scalar_lea.vmem %s3968_s11, %s2997_s4  ;;  %s3974_s10 = sld [smem:[#allocation25_spill]] }
  0x31   : > { %3969 = sst [smem:[#allocation9_spill]] %s3596_s17  ;;  %s3605_s15 = scalar_lea.vmem %s3971_s13, %s2997_s4 }
  0x32   : > { %3972 = sst [smem:[#allocation10_spill]] %s3605_s15  ;;  %s3634_s9 = scalar_lea.vmem %s3978_s14, %s3259_s0 }
  0x33   : > { %s3975_s17 = sld [smem:[#allocation26_spill]]  ;;  %s918_s4 = scalar_lea.vmem %s3976_s6, %s3539_s24 }
  0x34   : > { %s3977_s15 = sld [smem:[#allocation27_spill]] }
  0x36   : > { %s3615_s5 = scalar_lea.vmem %s3974_s10, %s3000_s27  ;;  %s3979_s10 = sld [smem:[#allocation3_spill]] }
  0x39   : > { %s906_s16 = scalar_lea.vmem %s3975_s17, %s3536_s23 }
  0x3a   : > { %s3629_s1 = scalar_lea.vmem %s3977_s15, %s3259_s0 }
  0x3c   : > { %p2910_p7 = scmp.ne.s32.totalorder %s3979_s10, 0 }
  0x3e   : > { %923 = sbr.rel (%p2910_p7) target bundleno = 69 (0x45), region = 100 }
  0x43   : > { %v924_v0 = vld [vmem:[%s841_s2] sm:$0xff]  ;;  %vm925_vm0 = vcmask 261120  }
  0x44   : > { %926 = vst.msk [vmem:[#allocation2] sm:$0xff] %vm925_vm0, %v924_v0 }
  0x45 PF: > { %v3302_v1 = vld [vmem:[%s3572_s18 + $0x8] sm:$0xff]   ;;  %v3398_v2 = vmov 0.0   ;;  %v3303_v3 = vld [vmem:[%s3572_s18 + $0x18] sm:$0xff]   ;;  %v3304_v4 = vld [vmem:[%s3572_s18] sm:$0xff]   ;;  %vm3399_vm1 = vmmov 0   ;;  %vm999_vm2 = vcmask 261120   ;;  %s3984_s15 = scalar_lea.vmem %s3915_s8, %s3536_s23 }
  0x46   : > { %3069 = vmatprep.subr.bf16.mxu0 %v3398_v2  ;;  %3077 = vmatprep.subr.bf16.mxu1 %v3398_v2  ;;  %v3305_v5 = vld [vmem:[%s3572_s18 + $0x10] sm:$0xff]   ;;  %v3306_v8 = vld [vmem:[%s3572_s18 + $0x28] sm:$0xff]   ;;  %v3307_v9 = vld [vmem:[%s3572_s18 + $0x38] sm:$0xff]   ;;  %s3980_s13 = sld [smem:[#allocation12_spill]]  ;;  %vm1336_vm3 = vcmask 130048   ;;  %vm1459_vm4 = vcmask 1043456  }
  0x47   : > { %3070 = vmatpush3.bf16.msra.mxu0 %v3302_v1  ;;  %3073 = vmatprep.mubr.msk.bf16.mxu0 %vm3399_vm1, %v3398_v2  ;;  %v3308_v10 = vld [vmem:[%s3572_s18 + $0x20] sm:$0xff]   ;;  %v3309_v12 = vld [vmem:[%s3572_s18 + $0x30] sm:$0xff]   ;;  %v3310_v14 = vld [vmem:[%s3572_s18 + $0x48] sm:$0xff]   ;;  %vm1429_vm5 = vcmask 64512   ;;  %s3985_s29 = sld [smem:[#allocation13_spill]]  ;;  %vm2547_vm6 = vcmask 523264  }
  0x48   : > { %3078 = vmatpush3.bf16.msra.mxu1 %v3303_v3  ;;  %3071 = vmatprep.subr.bf16.mxu0 %v3398_v2  ;;  %v3311_v15 = vld [vmem:[%s3572_s18 + $0x40] sm:$0xff]   ;;  %v3312_v16 = vld [vmem:[%s3572_s18 + $0x58] sm:$0xff]   ;;  %v3313_v17 = vld [vmem:[%s3572_s18 + $0x50] sm:$0xff]   ;;  %s3982_s18 = sld [smem:[#allocation14_spill]] }
  0x49   : > { %3079 = vmatprep.subr.bf16.mxu1 %v3398_v2  ;;  %3081 = vmatprep.mubr.msk.bf16.mxu1 %vm3399_vm1, %v3398_v2  ;;  %v2919_v25 = vld [vmem:[%s3581_s25 + $0x2] ss:$0 sm:$0xff]  ;;  %v2920_v27 = vld [vmem:[%s3581_s25 + $0x3] ss:$0 sm:$0xff]  ;;  %v2911_v28 = vld [vmem:[%s3581_s25] ss:$0 sm:$0xff] }
  0x4a   : > { %v2912_v30 = vld [vmem:[%s3581_s25 + $0x1] ss:$0 sm:$0xff]  ;;  %v2927_v50 = vld [vmem:[%s3581_s25 + $0x4] ss:$0 sm:$0xff]  ;;  %v2928_v54 = vld [vmem:[%s3581_s25 + $0x5] ss:$0 sm:$0xff] }
  0x4b   : > { %v3649_v6 = vld [vmem:[#allocation2] sm:$0xff]  ;;  %3072 = vmatpush3.bf16.msra.mxu0 %v3304_v4  ;;  %s3987_s0 = sld [smem:[#allocation15_spill]] }
  0x4c   : > { %v973_v7 = vpack.c.bf16 %v3649_v6, %v3649_v6  ;;  %3080 = vmatpush3.bf16.msra.mxu1 %v3305_v5  ;;  %3085 = vmatprep.subr.bf16.mxu0 %v3398_v2  ;;  %s3981_s14 = scalar_lea.vmem %s3980_s13, %s3539_s24  ;;  %s3990_s10 = sld [smem:[#allocation22_spill]] }
  0x4d   : > { %3093 = vmatprep.subr.bf16.mxu1 %v3398_v2  ;;  %v928_v11 = vld [vmem:[%s3981_s14] sm:$0xff]  ;;  %s3986_s22 = scalar_lea.vmem %s3985_s29, %s3539_s24  ;;  %s3992_s12 = sld [smem:[#allocation10_spill]] }
  0x4e   : > { %3074 = vmatmul.mubr.msk.bf16.vlgmr.msra.gmra.mxu0 %vm999_vm2, %v973_v7  ;;  %v974_v13 = vpack.c.bf16 %v928_v11, %v928_v11  ;;  %s3983_s17 = scalar_lea.vmem %s3982_s18, %s3539_s24  ;;  %s3993_s2 = sld [smem:[#allocation24_spill]] }
  0x4f   : > { %3082 = vmatmul.mubr.msk.bf16.vlgmr.msra.gmra.mxu1 %vm999_vm2, %v973_v7  ;;  %3086 = vmatpush3.bf16.msra.mxu0 %v3306_v8  ;;  %v930_v3 = vld [vmem:[%s3983_s17] sm:$0xff] }
  0x50   : > { %3094 = vmatpush3.bf16.msra.mxu1 %v3307_v9  ;;  %3087 = vmatprep.subr.bf16.mxu0 %v3398_v2 }
  0x51   : > { %3095 = vmatprep.subr.bf16.mxu1 %v3398_v2  ;;  %3089 = vmatprep.mubr.msk.bf16.mxu0 %vm3399_vm1, %v3398_v2  ;;  %s3988_s6 = scalar_lea.vmem %s3987_s0, %s4010_s30  ;;  %s3989_s30 = sld [smem:[#allocation9_spill]] }
  0x52   : > { %3097 = vmatprep.mubr.msk.bf16.mxu1 %vm3399_vm1, %v3398_v2  ;;  %s3991_s11 = scalar_lea.vmem %s3990_s10, %s3536_s23 }
  0x53   : > { %3088 = vmatpush3.bf16.msra.mxu0 %v3308_v10 }
  0x54   : > { %3096 = vmatpush3.bf16.msra.mxu1 %v3309_v12  ;;  %3101 = vmatprep.subr.bf16.mxu0 %v3398_v2  ;;  %s3994_s25 = scalar_lea.vmem %s3993_s2, %s3536_s23  ;;  %s3996_s23 = sld [smem:[#allocation3_spill]] }
  0x55   : > { %3109 = vmatprep.subr.bf16.mxu1 %v3398_v2 }
  0x56   : > { %3090 = vmatmul.mubr.msk.bf16.vlgmr.msra.gmra.mxu0 %vm999_vm2, %v974_v13 }
  0x57   : > { %3098 = vmatmul.mubr.msk.bf16.vlgmr.msra.gmra.mxu1 %vm999_vm2, %v974_v13  ;;  %3105 = vmatprep.mubr.msk.bf16.mxu0 %vm3399_vm1, %v3398_v2 }
  0x58   : > { %3113 = vmatprep.mubr.msk.bf16.mxu1 %vm3399_vm1, %v3398_v2  ;;  %3102 = vmatpush3.bf16.msra.mxu0 %v3310_v14 }
  0x59   : > { %3103 = vmatprep.subr.bf16.mxu0 %v3398_v2  ;;  %3110 = vmatpush3.bf16.msra.mxu1 %v3312_v16 }
  0x5a   : > { %3111 = vmatprep.subr.bf16.mxu1 %v3398_v2  ;;  %p2994_p8 = scmp.ne.s32.totalorder %s3996_s23, 1 }
  0x5c   : > { %3104 = vmatpush3.bf16.msra.mxu0 %v3311_v15 }
  0x5d   : > { %3117 = vmatprep.subr.bf16.mxu0 %v3398_v2  ;;  %3112 = vmatpush3.bf16.msra.mxu1 %v3313_v17 }
  0x5e   : > { %3123 = vmatprep.subr.bf16.mxu1 %v3398_v2 }
  0x5f   : > { %3106 = vmatmul.mubr.msk.bf16.vlgmr.msra.gmra.mxu0 %vm999_vm2, %v974_v13 }
  0x60   : > { %3119 = vmatprep.mubr.msk.bf16.mxu0 %vm3399_vm1, %v3398_v2  ;;  %3114 = vmatmul.mubr.msk.bf16.vlgmr.msra.gmra.mxu1 %vm999_vm2, %v974_v13 }
  0x61   : > { %3125 = vmatprep.mubr.msk.bf16.mxu1 %vm3399_vm1, %v3398_v2 }
 0x10e   : > { %v1037_v18 = vpop.f32.mrf.mxu0 }
 0x10f   : > { %v1089_v19 = vpop.f32.mrf.mxu1  ;;  %v1038_v35 = vadd.f32 %v2911_v28, %v1037_v18 }
 0x110   : > { %v3075_v20 = vpop.f32.mrf.mxu0  ;;  %v1090_v38 = vadd.f32 %v2912_v30, %v1089_v19 }
 0x111   : > { %v3083_v21 = vpop.f32.mrf.mxu1  ;;  %v1095_v45 = vmul.f32 0.25, %v1038_v35  ;;  %v3314_v35 = vld [vmem:[%s3567_s21] sm:$0xff]  }
 0x112   : > { %v1040_v22 = vpop.f32.mrf.mxu0  ;;  %v1096_v47 = vmul.f32 0.25, %v1090_v38 }
 0x113   : > { %v1092_v23 = vpop.f32.mrf.mxu1  ;;  %v1332_v48 = vpack.c.bf16 %v1095_v45, %v1095_v45 }
 0x114   : > { %v3076_v24 = vpop.f32.mrf.mxu0  ;;  %v1333_v49 = vpack.c.bf16 %v1096_v47, %v1096_v47 }
 0x115   : > { %v3084_v26 = vpop.f32.mrf.mxu1 }
 0x116   : > { %v1158_v29 = vpop.f32.mrf.mxu0 }
 0x117   : > { %v1159_v31 = vadd.f32 %v2919_v25, %v1158_v29  ;;  %v1210_v32 = vpop.f32.mrf.mxu1 }
 0x118   : > { %v1211_v33 = vadd.f32 %v2920_v27, %v1210_v32  ;;  %v3091_v34 = vpop.f32.mrf.mxu0 }
 0x119   : > { %v1334_v36 = vpack.c.bf16 %v1159_v31, %v1159_v31  ;;  %v3099_v37 = vpop.f32.mrf.mxu1 }
 0x11a   : > { %v1335_v39 = vpack.c.bf16 %v1211_v33, %v1211_v33  ;;  %v1161_v40 = vpop.f32.mrf.mxu0 }
 0x11b   : > { %v1341_v41 = vsel %vm1336_vm3, %v1334_v36, 0  ;;  %v1213_v42 = vpop.f32.mrf.mxu1  ;;  %v3315_v36 = vld [vmem:[%s3567_s21 + $0x8] sm:$0xff]  }
 0x11c   : > { %v1387_v43 = vsel %vm1336_vm3, %v1335_v39, 0  ;;  %v3092_v44 = vpop.f32.mrf.mxu0  ;;  %3118 = vmatpush3.bf16.xpose.msra.mxu0 %v1341_v41 }
 0x11d   : > { %v3100_v46 = vpop.f32.mrf.mxu1  ;;  %3124 = vmatpush3.bf16.xpose.msra.mxu1 %v1387_v43  ;;  %3129 = vmatprep.subr.bf16.mxu0 %v3398_v2 }
 0x11e   : > { %3135 = vmatprep.subr.bf16.mxu1 %v3398_v2 }
 0x11f   : > { %v1274_v51 = vpop.f32.mrf.mxu0 }
 0x120   : > { %v1275_v52 = vadd.f32 %v2927_v50, %v1274_v51  ;;  %v1326_v57 = vpop.f32.mrf.mxu1 }
 0x121   : > { %v3107_v53 = vpop.f32.mrf.mxu0  ;;  %v1327_v59 = vadd.f32 %v2928_v54, %v1326_v57 }
 0x122   : > { %v1454_v55 = vpack.c.bf16 %v1275_v52, %v1275_v52  ;;  %v3115_v61 = vpop.f32.mrf.mxu1  ;;  %v2943_v52 = vld [vmem:[%s3984_s15] ss:$0 sm:$0xff] }
 0x123   : > { %3120 = vmatmul.mubr.msk.bf16.vlgmr.msra.gmra.mxu0 %vm1336_vm3, %v1332_v48  ;;  %v1277_v56 = vpop.f32.mrf.mxu0  ;;  %v1455_v62 = vpack.c.bf16 %v1327_v59, %v1327_v59 }
 0x124   : > { %3126 = vmatmul.mubr.msk.bf16.vlgmr.msra.gmra.mxu1 %vm1336_vm3, %v1333_v49  ;;  %3131 = vmatprep.mubr.msk.bf16.mxu0 %vm3399_vm1, %v3398_v2  ;;  %v1461_v58 = vsel %vm1459_vm4, %v1454_v55, 0  ;;  %v1329_v63 = vpop.f32.mrf.mxu1 }
 0x125   : > { %3137 = vmatprep.mubr.msk.bf16.mxu1 %vm3399_vm1, %v3398_v2  ;;  %v3108_v60 = vpop.f32.mrf.mxu0  ;;  %3130 = vmatpush3.bf16.msra.mxu0 %v1461_v58  ;;  %v1507_v0 = vsel %vm1459_vm4, %v1455_v62, 0 }
 0x126   : > { %3141 = vmatprep.subr.bf16.mxu0 %v3398_v2  ;;  %v3116_v1 = vpop.f32.mrf.mxu1  ;;  %3136 = vmatpush3.bf16.msra.mxu1 %v1507_v0 }
 0x127   : > { %3147 = vmatprep.subr.bf16.mxu1 %v3398_v2 }
 0x1e3   : > { %v1377_v4 = vpop.f32.mrf.mxu0 }
 0x1e4   : > { %v1378_v5 = vadd.f32 %v1377_v4, %v930_v3  ;;  %v1423_v7 = vpop.f32.mrf.mxu1  ;;  %v3316_v4 = vld [vmem:[%s3586_s28 + $0x8] sm:$0xff]  }
 0x1e5   : > { %v3121_v8 = vpop.f32.mrf.mxu0  ;;  %v1424_v9 = vadd.f32 %v1423_v7, %v930_v3  ;;  %v3318_v7 = vld [vmem:[%s3586_s28] sm:$0xff]  }
 0x1e6   : > { %v3127_v10 = vpop.f32.mrf.mxu1  ;;  %v1430_v11 = vsel %vm1429_vm5, %v1378_v5, -inf  ;;  %v3319_v8 = vld [vmem:[%s3586_s28 + $0x10] sm:$0xff]  }
 0x1e7   : > { %1431 = vmax.xlane.f32.xlu0 %v1430_v11  ;;  %v1380_v12 = vpop.f32.mrf.mxu0  ;;  %v1433_v16 = vsel %vm1429_vm5, %v1424_v9, -inf }
 0x1e8   : > { %v1426_v13 = vpop.f32.mrf.mxu1  ;;  %v2944_v12 = vld [vmem:[%s3629_s1] ss:$0 sm:$0xff] }
 0x1e9   : > { %v3122_v14 = vpop.f32.mrf.mxu0 }
 0x1ea   : > { %v3128_v15 = vpop.f32.mrf.mxu1  ;;  %v2945_v14 = vld [vmem:[%s3634_s9] ss:$0 sm:$0xff] }
 0x1eb   : > { %1434 = vmax.xlane.f32.xlu0 %v1433_v16 }
 0x270   : > { %v1432_v17 = vpop.xlane.xlu0 %1431 }
 0x271   : > { %v1436_v18 = vsub.f32 %v1378_v5, %v1432_v17  ;;  %v3317_v5 = vld [vmem:[%s3586_s28 + $0x18] sm:$0xff]   ;;  %v3320_v17 = vld [vmem:[%s3586_s28 + $0x28] sm:$0xff]  }
 0x273   : > { %v1438_v19 = vmul.f32 1.442695, %v1436_v18  ;;  %v3321_v18 = vld [vmem:[%s3586_s28 + $0x38] sm:$0xff]  }
 0x274   : > { %v1435_v20 = vpop.xlane.xlu0 %1434 }
 0x275   : > { %3336 = vpow2.f32 %v1438_v19  ;;  %v1437_v21 = vsub.f32 %v1424_v9, %v1435_v20  ;;  %v3322_v20 = vld [vmem:[%s3586_s28 + $0x20] sm:$0xff]  }
 0x277   : > { %v1440_v22 = vmul.f32 1.442695, %v1437_v21  ;;  %v3323_v21 = vld [vmem:[%s3586_s28 + $0x30] sm:$0xff]  }
 0x279   : > { %3338 = vpow2.f32 %v1440_v22  ;;  %v929_v22 = vld [vmem:[%s3986_s22] sm:$0xff] }
 0x282   : > { %v3337_v23 = vpop.eup %3336 }
 0x283   : > { %v1442_v24 = vsel %vm1429_vm5, %v3337_v23, 0.0 }
 0x284   : > { %1443 = vadd.xlane.f32.xlu1 %v1442_v24  ;;  %v3324_v24 = vld [vmem:[%s3586_s28 + $0x48] sm:$0xff]  }
 0x286   : > { %v3339_v25 = vpop.eup %3338 }
 0x287   : > { %v1445_v26 = vsel %vm1429_vm5, %v3339_v25, 0.0 }
 0x288   : > { %1446 = vadd.xlane.f32.xlu1 %v1445_v26  ;;  %v3326_v26 = vld [vmem:[%s3586_s28 + $0x40] sm:$0xff]  }
 0x30d   : > { %v1444_v27 = vpop.xlane.xlu1 %1443 }
 0x30e   : > { %3340 = vrcp.f32 %v1444_v27  ;;  %v3327_v27 = vld [vmem:[%s3586_s28 + $0x50] sm:$0xff]  }
 0x311   : > { %v1447_v28 = vpop.xlane.xlu1 %1446 }
 0x312   : > { %3342 = vrcp.f32 %v1447_v28 }
 0x31b   : > { %v3341_v29 = vpop.eup %3340 }
 0x31c   : > { %v1450_v30 = vmul.f32 %v3341_v29, %v3337_v23  ;;  %v1724_v23 = vpack.c.bf16 %v929_v22, %v929_v22 }
 0x31e   : > { %v1452_v31 = vpack.c.bf16 %v1450_v30, %v1450_v30 }
 0x31f   : > { %v3343_v32 = vpop.eup %3342 }
 0x320   : > { %3132 = vmatmul.mubr.msk.bf16.vlgmr.msra.gmra.mxu0 %vm1429_vm5, %v1452_v31  ;;  %v1451_v33 = vmul.f32 %v3343_v32, %v3339_v25  ;;  %v3325_v25 = vld [vmem:[%s3586_s28 + $0x58] sm:$0xff]  }
 0x321   : > { %3143 = vmatprep.mubr.msk.bf16.mxu0 %vm3399_vm1, %v3398_v2  ;;  %3142 = vmatpush3.bf16.msra.mxu0 %v3314_v35 }
 0x322   : > { %v1453_v34 = vpack.c.bf16 %v1451_v33, %v1451_v33  ;;  %3153 = vmatprep.subr.bf16.mxu0 %v3398_v2 }
 0x324   : > { %3138 = vmatmul.mubr.msk.bf16.vlgmr.msra.gmra.mxu1 %vm1429_vm5, %v1453_v34 }
 0x325   : > { %3149 = vmatprep.mubr.msk.bf16.mxu1 %vm3399_vm1, %v3398_v2  ;;  %3148 = vmatpush3.bf16.msra.mxu1 %v3315_v36  ;;  %v2954_v36 = vld [vmem:[%s3591_s20 + $0x2] ss:$0 sm:$0xff] }
 0x326   : > { %3161 = vmatprep.subr.bf16.mxu1 %v3398_v2 }
 0x3e0   : > { %v1497_v37 = vpop.f32.mrf.mxu0 }
 0x3e1   : > { %v1549_v38 = vpack.c.bf16 %v1497_v37, %v1497_v37  ;;  %v2955_v37 = vld [vmem:[%s3591_s20 + $0x3] ss:$0 sm:$0xff] }
 0x3e2   : > { %v3133_v39 = vpop.f32.mrf.mxu0 }
 0x3e3   : > { %3144 = vmatmul.mubr.msk.bf16.vlgmr.msra.gmra.mxu0 %vm1336_vm3, %v1549_v38  ;;  %v2946_v38 = vld [vmem:[%s3591_s20] ss:$0 sm:$0xff]  ;;  %v2947_v39 = vld [vmem:[%s3591_s20 + $0x1] ss:$0 sm:$0xff] }
 0x3e4   : > { %v1500_v40 = vpop.f32.mrf.mxu0  ;;  %v1543_v41 = vpop.f32.mrf.mxu1  ;;  %3157 = vmatprep.mubr.msk.bf16.mxu0 %vm3399_vm1, %v3398_v2  ;;  %3154 = vmatpush3.bf16.msra.mxu0 %v3316_v4 }
 0x3e5   : > { %v1550_v42 = vpack.c.bf16 %v1543_v41, %v1543_v41  ;;  %3155 = vmatprep.subr.bf16.mxu0 %v3398_v2 }
 0x3e6   : > { %v3134_v43 = vpop.f32.mrf.mxu0  ;;  %v3139_v44 = vpop.f32.mrf.mxu1 }
 0x3e7   : > { %3150 = vmatmul.mubr.msk.bf16.vlgmr.msra.gmra.mxu1 %vm1336_vm3, %v1550_v42 }
 0x3e8   : > { %v1546_v45 = vpop.f32.mrf.mxu1  ;;  %3165 = vmatprep.mubr.msk.bf16.mxu1 %vm3399_vm1, %v3398_v2  ;;  %3162 = vmatpush3.bf16.msra.mxu1 %v3317_v5 }
 0x3e9   : > { %3163 = vmatprep.subr.bf16.mxu1 %v3398_v2  ;;  %3156 = vmatpush3.bf16.msra.mxu0 %v3318_v7 }
 0x3ea   : > { %v3140_v46 = vpop.f32.mrf.mxu1  ;;  %3169 = vmatprep.subr.bf16.mxu0 %v3398_v2 }
 0x3ec   : > { %3164 = vmatpush3.bf16.msra.mxu1 %v3319_v8 }
 0x3ed   : > { %3177 = vmatprep.subr.bf16.mxu1 %v3398_v2 }
 0x4a3   : > { %v1594_v47 = vpop.f32.mrf.mxu0 }
 0x4a4   : > { %v1649_v51 = vsel %vm999_vm2, %v1594_v47, 0.0 }
 0x4a5   : > { %v3145_v48 = vpop.f32.mrf.mxu0 }
 0x4a7   : > { %v1597_v49 = vpop.f32.mrf.mxu0  ;;  %v1643_v50 = vpop.f32.mrf.mxu1 }
 0x4a8   : > { %v1650_v53 = vsel %vm999_vm2, %v1643_v50, 0.0 }
 0x4a9   : > { %v1651_v54 = vadd.f32 %v1650_v53, %v1649_v51  ;;  %v3146_v55 = vpop.f32.mrf.mxu0  ;;  %v3151_v56 = vpop.f32.mrf.mxu1 }
 0x4ab   : > { %v1658_v57 = vadd.f32 %v2943_v52, %v1651_v54  ;;  %v1646_v58 = vpop.f32.mrf.mxu1 }
 0x4ad   : > { %v3152_v59 = vpop.f32.mrf.mxu1  ;;  %v1659_v60 = vadd.f32 %v1658_v57, %v3649_v6 }
 0x4af   : > { %v1660_v61 = vsel %vm999_vm2, %v1659_v60, 0.0 }
 0x4b0   : > { %1661 = vadd.xlane.f32.xlu0 %v1660_v61  ;;  %v2963_v61 = vld [vmem:[%s3591_s20 + $0x5] ss:$0 sm:$0xff] }
 0x539   : > { %v1662_v62 = vpop.xlane.xlu0 %1661 }
 0x53a   : > { %v1664_v63 = vmul.f32 0.03125, %v1662_v62 }
 0x53c   : > { %v1665_v0 = vsub.f32 %v1659_v60, %v1664_v63  ;;  %v2962_v60 = vld [vmem:[%s3591_s20 + $0x4] ss:$0 sm:$0xff] }
 0x53e   : > { %v1666_v1 = vmul.f32 %v1665_v0, %v1665_v0 }
 0x540   : > { %v1667_v3 = vsel %vm999_vm2, %v1666_v1, 0.0 }
 0x541   : > { %1668 = vadd.xlane.f32.xlu1 %v1667_v3 }
 0x5ca   : > { %v1669_v6 = vpop.xlane.xlu1 %1668 }
 0x5cb   : > { %v1670_v9 = vmul.f32 0.03125, %v1669_v6 }
 0x5cd   : > { %v1671_v10 = vadd.f32 1e-05, %v1670_v9 }
 0x5cf   : > { %3344 = vrsqrt.f32 %v1671_v10 }
 0x5dc   : > { %v3345_v11 = vpop.eup %3344 }
 0x5dd   : > { %v1673_v13 = vmul.f32 %v3345_v11, %v1665_v0 }
 0x5df   : > { %v1680_v15 = vmul.f32 %v2944_v12, %v1673_v13  ;;  %v2970_v13 = vld [vmem:[%s3988_s6] ss:$0 sm:$0xff] }
 0x5e1   : > { %v3759_v16 = vadd.f32 %v2945_v14, %v1680_v15 }
 0x5e3   : > { %v1723_v19 = vpack.c.bf16 %v3759_v16, %v3759_v16 }
 0x5e5   : > { %3158 = vmatmul.mubr.msk.bf16.vlgmr.msra.gmra.mxu0 %vm999_vm2, %v1723_v19  ;;  %3166 = vmatmul.mubr.msk.bf16.vlgmr.msra.gmra.mxu1 %vm999_vm2, %v1723_v19 }
 0x5e6   : > { %3170 = vmatpush3.bf16.msra.mxu0 %v3320_v17  ;;  %3178 = vmatpush3.bf16.msra.mxu1 %v3321_v18 }
 0x5e7   : > { %3171 = vmatprep.subr.bf16.mxu0 %v3398_v2  ;;  %3179 = vmatprep.subr.bf16.mxu1 %v3398_v2 }
 0x5e8   : > { %3173 = vmatprep.mubr.msk.bf16.mxu0 %vm3399_vm1, %v3398_v2  ;;  %3181 = vmatprep.mubr.msk.bf16.mxu1 %vm3399_vm1, %v3398_v2 }
 0x5ea   : > { %3172 = vmatpush3.bf16.msra.mxu0 %v3322_v20  ;;  %3180 = vmatpush3.bf16.msra.mxu1 %v3323_v21 }
 0x5eb   : > { %3185 = vmatprep.subr.bf16.mxu0 %v3398_v2  ;;  %3193 = vmatprep.subr.bf16.mxu1 %v3398_v2 }
 0x5ed   : > { %3174 = vmatmul.mubr.msk.bf16.vlgmr.msra.gmra.mxu0 %vm999_vm2, %v1724_v23  ;;  %3182 = vmatmul.mubr.msk.bf16.vlgmr.msra.gmra.mxu1 %vm999_vm2, %v1724_v23 }
 0x5ee   : > { %3189 = vmatprep.mubr.msk.bf16.mxu0 %vm3399_vm1, %v3398_v2  ;;  %3197 = vmatprep.mubr.msk.bf16.mxu1 %vm3399_vm1, %v3398_v2 }
 0x5ef   : > { %3186 = vmatpush3.bf16.msra.mxu0 %v3324_v24  ;;  %3194 = vmatpush3.bf16.msra.mxu1 %v3325_v25 }
 0x5f0   : > { %3187 = vmatprep.subr.bf16.mxu0 %v3398_v2  ;;  %3195 = vmatprep.subr.bf16.mxu1 %v3398_v2 }
 0x5f3   : > { %3188 = vmatpush3.bf16.msra.mxu0 %v3326_v26  ;;  %3196 = vmatpush3.bf16.msra.mxu1 %v3327_v27 }
 0x5f4   : > { %3201 = vmatprep.subr.bf16.mxu0 %v3398_v2  ;;  %3207 = vmatprep.subr.bf16.mxu1 %v3398_v2 }
 0x5f6   : > { %3190 = vmatmul.mubr.msk.bf16.vlgmr.msra.gmra.mxu0 %vm999_vm2, %v1724_v23  ;;  %3198 = vmatmul.mubr.msk.bf16.vlgmr.msra.gmra.mxu1 %vm999_vm2, %v1724_v23 }
 0x5f7   : > { %3203 = vmatprep.mubr.msk.bf16.mxu0 %vm3399_vm1, %v3398_v2  ;;  %3209 = vmatprep.mubr.msk.bf16.mxu1 %vm3399_vm1, %v3398_v2 }
 0x6a5   : > { %v1786_v28 = vpop.f32.mrf.mxu0  ;;  %v1838_v29 = vpop.f32.mrf.mxu1 }
 0x6a6   : > { %v1787_v46 = vadd.f32 %v2946_v38, %v1786_v28  ;;  %v1839_v47 = vadd.f32 %v2947_v39, %v1838_v29 }
 0x6a7   : > { %v3159_v30 = vpop.f32.mrf.mxu0  ;;  %v3167_v31 = vpop.f32.mrf.mxu1 }
 0x6a8   : > { %v1844_v56 = vmul.f32 0.25, %v1787_v46  ;;  %v1845_v57 = vmul.f32 0.25, %v1839_v47 }
 0x6a9   : > { %v1789_v32 = vpop.f32.mrf.mxu0  ;;  %v1841_v33 = vpop.f32.mrf.mxu1 }
 0x6aa   : > { %v2081_v58 = vpack.c.bf16 %v1844_v56, %v1844_v56  ;;  %v2082_v59 = vpack.c.bf16 %v1845_v57, %v1845_v57 }
 0x6ab   : > { %v3160_v34 = vpop.f32.mrf.mxu0  ;;  %v3168_v35 = vpop.f32.mrf.mxu1 }
 0x6ad   : > { %v1907_v40 = vpop.f32.mrf.mxu0  ;;  %v1959_v41 = vpop.f32.mrf.mxu1 }
 0x6ae   : > { %v1908_v42 = vadd.f32 %v2954_v36, %v1907_v40  ;;  %v1960_v43 = vadd.f32 %v2955_v37, %v1959_v41 }
 0x6af   : > { %v3175_v44 = vpop.f32.mrf.mxu0  ;;  %v3183_v45 = vpop.f32.mrf.mxu1 }
 0x6b0   : > { %v2083_v48 = vpack.c.bf16 %v1908_v42, %v1908_v42  ;;  %v2084_v49 = vpack.c.bf16 %v1960_v43, %v1960_v43  ;;  %v3329_v43 = vld [vmem:[%s3989_s30 + $0x8] sm:$0xff]   ;;  %v3328_v45 = vld [vmem:[%s3989_s30] sm:$0xff]  }
 0x6b1   : > { %v1910_v50 = vpop.f32.mrf.mxu0  ;;  %v1962_v51 = vpop.f32.mrf.mxu1 }
 0x6b2   : > { %v2095_v52 = vsel %vm1336_vm3, %v2083_v48, 0  ;;  %v2141_v53 = vsel %vm1336_vm3, %v2084_v49, 0 }
 0x6b3   : > { %v3176_v54 = vpop.f32.mrf.mxu0  ;;  %v3184_v55 = vpop.f32.mrf.mxu1  ;;  %3202 = vmatpush3.bf16.xpose.msra.mxu0 %v2095_v52  ;;  %3208 = vmatpush3.bf16.xpose.msra.mxu1 %v2141_v53 }
 0x6b4   : > { %3213 = vmatprep.subr.bf16.mxu0 %v3398_v2  ;;  %3219 = vmatprep.subr.bf16.mxu1 %v3398_v2 }
 0x6b6   : > { %v2023_v62 = vpop.f32.mrf.mxu0  ;;  %v2075_v63 = vpop.f32.mrf.mxu1 }
 0x6b7   : > { %v2024_v0 = vadd.f32 %v2962_v60, %v2023_v62  ;;  %v2076_v1 = vadd.f32 %v2963_v61, %v2075_v63  ;;  %v2979_v61 = vld [vmem:[%s3991_s11] ss:$0 sm:$0xff] }
 0x6b8   : > { %v3191_v3 = vpop.f32.mrf.mxu0  ;;  %v3199_v4 = vpop.f32.mrf.mxu1 }
 0x6b9   : > { %v2207_v5 = vpack.c.bf16 %v2024_v0, %v2024_v0  ;;  %v2208_v7 = vpack.c.bf16 %v2076_v1, %v2076_v1 }
 0x6ba   : > { %3204 = vmatmul.mubr.msk.bf16.vlgmr.msra.gmra.mxu0 %vm1336_vm3, %v2081_v58  ;;  %3210 = vmatmul.mubr.msk.bf16.vlgmr.msra.gmra.mxu1 %vm1336_vm3, %v2082_v59  ;;  %v2026_v8 = vpop.f32.mrf.mxu0  ;;  %v2078_v6 = vpop.f32.mrf.mxu1 }
 0x6bb   : > { %3215 = vmatprep.mubr.msk.bf16.mxu0 %vm3399_vm1, %v3398_v2  ;;  %3221 = vmatprep.mubr.msk.bf16.mxu1 %vm3399_vm1, %v3398_v2  ;;  %v2213_v9 = vsel %vm1459_vm4, %v2207_v5, 0  ;;  %v2259_v10 = vsel %vm1459_vm4, %v2208_v7, 0 }
 0x6bc   : > { %v3192_v11 = vpop.f32.mrf.mxu0  ;;  %v3200_v12 = vpop.f32.mrf.mxu1  ;;  %3214 = vmatpush3.bf16.msra.mxu0 %v2213_v9  ;;  %3220 = vmatpush3.bf16.msra.mxu1 %v2259_v10 }
 0x6bd   : > { %3225 = vmatprep.subr.bf16.mxu0 %v3398_v2  ;;  %3231 = vmatprep.subr.bf16.mxu1 %v3398_v2 }
 0x77a   : > { %v2131_v14 = vpop.f32.mrf.mxu0  ;;  %v2177_v15 = vpop.f32.mrf.mxu1 }
 0x77b   : > { %v2132_v17 = vadd.f32 %v2970_v13, %v2131_v14  ;;  %v2178_v18 = vadd.f32 %v2970_v13, %v2177_v15  ;;  %v3330_v14 = vld [vmem:[%s3992_s12 + $0x8] sm:$0xff]   ;;  %v3331_v15 = vld [vmem:[%s3992_s12] sm:$0xff]  }
 0x77c   : > { %v3205_v19 = vpop.f32.mrf.mxu0  ;;  %v3211_v20 = vpop.f32.mrf.mxu1 }
 0x77d   : > { %v2186_v21 = vsel %vm1429_vm5, %v2178_v18, -inf  ;;  %v2183_v22 = vsel %vm1429_vm5, %v2132_v17, -inf }
 0x77e   : > { %2187 = vmax.xlane.f32.xlu1 %v2186_v21  ;;  %v2180_v23 = vpop.f32.mrf.mxu1  ;;  %2184 = vmax.xlane.f32.xlu0 %v2183_v22  ;;  %v2134_v24 = vpop.f32.mrf.mxu0  ;;  %v2980_v22 = vld [vmem:[%s3629_s1 + $0x1] ss:$0 sm:$0xff] }
 0x77f   : > { %v2981_v24 = vld [vmem:[%s3634_s9 + $0x1] ss:$0 sm:$0xff] }
 0x780   : > { %v3206_v25 = vpop.f32.mrf.mxu0  ;;  %v3212_v26 = vpop.f32.mrf.mxu1 }
 0x807   : > { %v2188_v27 = vpop.xlane.xlu1 %2187  ;;  %v2185_v28 = vpop.xlane.xlu0 %2184 }
 0x808   : > { %v2190_v29 = vsub.f32 %v2178_v18, %v2188_v27  ;;  %v2189_v30 = vsub.f32 %v2132_v17, %v2185_v28  ;;  %v3333_v17 = vld [vmem:[%s3615_s5 + $0x10] sm:$0xff]   ;;  %v3334_v28 = vld [vmem:[%s3615_s5 + $0x8] sm:$0xff]  }
 0x80a   : > { %v2193_v31 = vmul.f32 1.442695, %v2190_v29  ;;  %v2191_v32 = vmul.f32 1.442695, %v2189_v30  ;;  %v3335_v29 = vld [vmem:[%s3615_s5] sm:$0xff]  }
 0x80b   : > { %v2982_v30 = vld [vmem:[%s3994_s25] ss:$0 sm:$0xff] }
 0x80c   : > { %3346 = vpow2.f32 %v2193_v31 }
 0x80d   : > { %3348 = vpow2.f32 %v2191_v32 }
 0x819   : > { %v3347_v33 = vpop.eup %3346 }
 0x81a   : > { %v3349_v34 = vpop.eup %3348  ;;  %v2198_v35 = vsel %vm1429_vm5, %v3347_v33, 0.0 }
 0x81b   : > { %2199 = vadd.xlane.f32.xlu1 %v2198_v35  ;;  %v2195_v36 = vsel %vm1429_vm5, %v3349_v34, 0.0 }
 0x81c   : > { %2196 = vadd.xlane.f32.xlu0 %v2195_v36 }
 0x8a4   : > { %v2200_v37 = vpop.xlane.xlu1 %2199 }
 0x8a5   : > { %3350 = vrcp.f32 %v2200_v37  ;;  %v2197_v38 = vpop.xlane.xlu0 %2196 }
 0x8a6   : > { %3352 = vrcp.f32 %v2197_v38 }
 0x8b2   : > { %v3351_v39 = vpop.eup %3350 }
 0x8b3   : > { %v3353_v40 = vpop.eup %3352  ;;  %v2204_v41 = vmul.f32 %v3351_v39, %v3347_v33 }
 0x8b4   : > { %v2203_v42 = vmul.f32 %v3353_v40, %v3349_v34 }
 0x8b5   : > { %v2206_v44 = vpack.c.bf16 %v2204_v41, %v2204_v41 }
 0x8b6   : > { %v2205_v46 = vpack.c.bf16 %v2203_v42, %v2203_v42 }
 0x8b7   : > { %3222 = vmatmul.mubr.msk.bf16.vlgmr.msra.gmra.mxu1 %vm1429_vm5, %v2206_v44 }
 0x8b8   : > { %3216 = vmatmul.mubr.msk.bf16.vlgmr.msra.gmra.mxu0 %vm1429_vm5, %v2205_v46  ;;  %3232 = vmatpush3.bf16.msra.mxu1 %v3329_v43 }
 0x8b9   : > { %3226 = vmatpush3.bf16.msra.mxu0 %v3328_v45  ;;  %3227 = vmatprep.mubr.msk.bf16.mxu0 %vm3399_vm1, %v3398_v2 }
 0x8ba   : > { %3233 = vmatprep.mubr.msk.bf16.mxu1 %vm3399_vm1, %v3398_v2  ;;  %3237 = vmatprep.subr.bf16.mxu0 %v3398_v2 }
 0x8bb   : > { %3245 = vmatprep.subr.bf16.mxu1 %v3398_v2 }
 0x977   : > { %v2295_v47 = vpop.f32.mrf.mxu1 }
 0x978   : > { %v2249_v48 = vpop.f32.mrf.mxu0  ;;  %v2302_v49 = vpack.c.bf16 %v2295_v47, %v2295_v47 }
 0x979   : > { %v2301_v50 = vpack.c.bf16 %v2249_v48, %v2249_v48  ;;  %v3223_v51 = vpop.f32.mrf.mxu1 }
 0x97a   : > { %v3217_v52 = vpop.f32.mrf.mxu0  ;;  %3234 = vmatmul.mubr.msk.bf16.vlgmr.msra.gmra.mxu1 %vm1336_vm3, %v2302_v49 }
 0x97b   : > { %3228 = vmatmul.mubr.msk.bf16.vlgmr.msra.gmra.mxu0 %vm1336_vm3, %v2301_v50  ;;  %v2298_v53 = vpop.f32.mrf.mxu1  ;;  %3253 = vmatprep.mubr.msk.bf16.mxu1 %vm3399_vm1, %v3398_v2 }
 0x97c   : > { %v2252_v54 = vpop.f32.mrf.mxu0  ;;  %3241 = vmatprep.mubr.msk.bf16.mxu0 %vm3399_vm1, %v3398_v2  ;;  %3238 = vmatpush3.bf16.msra.mxu0 %v3330_v14 }
 0x97d   : > { %v3224_v55 = vpop.f32.mrf.mxu1  ;;  %3239 = vmatprep.subr.bf16.mxu0 %v3398_v2  ;;  %v2992_v54 = vld [vmem:[%s3629_s1 + $0x2] ss:$0 sm:$0xff] }
 0x97e   : > { %v3218_v56 = vpop.f32.mrf.mxu0 }
 0x97f   : > { %v2993_v56 = vld [vmem:[%s3634_s9 + $0x2] ss:$0 sm:$0xff] }
 0x980   : > { %3240 = vmatpush3.bf16.msra.mxu0 %v3331_v15 }
 0xa3a   : > { %v2395_v57 = vpop.f32.mrf.mxu1 }
 0xa3b   : > { %v2346_v58 = vpop.f32.mrf.mxu0  ;;  %v2402_v59 = vsel %vm999_vm2, %v2395_v57, 0.0 }
 0xa3c   : > { %v2401_v60 = vsel %vm999_vm2, %v2346_v58, 0.0  ;;  %v3235_v62 = vpop.f32.mrf.mxu1 }
 0xa3d   : > { %v2403_v63 = vadd.f32 %v2402_v59, %v2401_v60  ;;  %v3229_v0 = vpop.f32.mrf.mxu0 }
 0xa3e   : > { %v2398_v1 = vpop.f32.mrf.mxu1 }
 0xa3f   : > { %v2410_v3 = vadd.f32 %v2979_v61, %v2403_v63  ;;  %v2349_v4 = vpop.f32.mrf.mxu0 }
 0xa40   : > { %v3236_v5 = vpop.f32.mrf.mxu1 }
 0xa41   : > { %v3230_v7 = vpop.f32.mrf.mxu0  ;;  %v2411_v8 = vadd.f32 %v2410_v3, %v3759_v16  ;;  %v3332_v16 = vld [vmem:[%s3615_s5 + $0x18] sm:$0xff]  }
 0xa42   : > { %3246 = vmatpush3.bf16.msra.mxu1 %v3332_v16 }
 0xa43   : > { %v2412_v6 = vsel %vm999_vm2, %v2411_v8, 0.0  ;;  %3247 = vmatprep.subr.bf16.mxu1 %v3398_v2 }
 0xa44   : > { %2413 = vadd.xlane.f32.xlu0 %v2412_v6 }
 0xa46   : > { %3248 = vmatpush3.bf16.msra.mxu1 %v3333_v17 }
 0xa47   : > { %3249 = vmatprep.subr.bf16.mxu1 %v3398_v2 }
 0xa4a   : > { %3250 = vmatpush3.bf16.msra.mxu1 %v3334_v28 }
 0xa4b   : > { %3251 = vmatprep.subr.bf16.mxu1 %v3398_v2  ;;  %v2986_v2 = vld [vmem:[%s906_s16] ss:$0 sm:$0xff] }
 0xa4e   : > { %3252 = vmatpush3.bf16.msra.mxu1 %v3335_v29 }
 0xacd   : > { %v2414_v9 = vpop.xlane.xlu0 %2413 }
 0xace   : > { %v2415_v10 = vmul.f32 0.03125, %v2414_v9 }
 0xad0   : > { %v2416_v11 = vsub.f32 %v2411_v8, %v2415_v10 }
 0xad2   : > { %v2417_v12 = vmul.f32 %v2416_v11, %v2416_v11 }
 0xad4   : > { %v2418_v13 = vsel %vm999_vm2, %v2417_v12, 0.0 }
 0xad5   : > { %2419 = vadd.xlane.f32.xlu1 %v2418_v13 }
 0xb5e   : > { %v2420_v18 = vpop.xlane.xlu1 %2419 }
 0xb5f   : > { %v2421_v19 = vmul.f32 0.03125, %v2420_v18 }
 0xb61   : > { %v2422_v20 = vadd.f32 1e-05, %v2421_v19 }
 0xb63   : > { %3354 = vrsqrt.f32 %v2422_v20 }
 0xb70   : > { %v3355_v21 = vpop.eup %3354 }
 0xb71   : > { %v2424_v23 = vmul.f32 %v3355_v21, %v2416_v11 }
 0xb73   : > { %v2431_v25 = vmul.f32 %v2980_v22, %v2424_v23 }
 0xb75   : > { %v2438_v26 = vadd.f32 %v2981_v24, %v2431_v25 }
 0xb77   : > { %v2443_v27 = vpack.c.bf16 %v2438_v26, %v2438_v26 }
 0xb79   : > { %3242 = vmatmul.mubr.msk.bf16.vlgmr.msra.gmra.mxu0 %vm999_vm2, %v2443_v27 }
 0xc39   : > { %v2500_v31 = vpop.f32.mrf.mxu0 }
 0xc3a   : > { %v2501_v32 = vadd.f32 %v2982_v30, %v2500_v31 }
 0xc3b   : > { %v3243_v33 = vpop.f32.mrf.mxu0 }
 0xc3c   : > { %v2506_v34 = vmax.f32 %v2501_v32, 0.0 }
 0xc3d   : > { %v2503_v35 = vpop.f32.mrf.mxu0 }
 0xc3e   : > { %v2515_v36 = vpack.c.bf16 %v2506_v34, %v2506_v34 }
 0xc3f   : > { %v3244_v37 = vpop.f32.mrf.mxu0 }
 0xc40   : > { %3254 = vmatmul.mubr.msk.bf16.vlgmr.msra.gmra.mxu1 %vm2547_vm6, %v2515_v36 }
 0xd00   : > { %v2585_v38 = vpop.f32.mrf.mxu1 }
 0xd01   : > { %v2586_v39 = vadd.f32 %v2986_v2, %v2585_v38 }
 0xd02   : > { %v3255_v40 = vpop.f32.mrf.mxu1 }
 0xd03   : > { %v2591_v41 = vadd.f32 %v2586_v39, %v2438_v26 }
 0xd04   : > { %v2588_v42 = vpop.f32.mrf.mxu1 }
 0xd05   : > { %v2592_v43 = vsel %vm999_vm2, %v2591_v41, 0.0 }
 0xd06   : > { %2593 = vadd.xlane.f32.xlu0 %v2592_v43  ;;  %v3256_v44 = vpop.f32.mrf.mxu1 }
 0xd8f   : > { %v2594_v45 = vpop.xlane.xlu0 %2593 }
 0xd90   : > { %v2595_v46 = vmul.f32 0.03125, %v2594_v45 }
 0xd92   : > { %v2596_v47 = vsub.f32 %v2591_v41, %v2595_v46 }
 0xd94   : > { %v2597_v48 = vmul.f32 %v2596_v47, %v2596_v47 }
 0xd96   : > { %v2598_v49 = vsel %vm999_vm2, %v2597_v48, 0.0 }
 0xd97   : > { %2599 = vadd.xlane.f32.xlu1 %v2598_v49 }
 0xe20   : > { %v2600_v50 = vpop.xlane.xlu1 %2599 }
 0xe21   : > { %v2601_v51 = vmul.f32 0.03125, %v2600_v50 }
 0xe23   : > { %v2602_v52 = vadd.f32 1e-05, %v2601_v51 }
 0xe25   : > { %3356 = vrsqrt.f32 %v2602_v52 }
 0xe32   : > { %v3357_v53 = vpop.eup %3356 }
 0xe33   : > { %v2604_v55 = vmul.f32 %v3357_v53, %v2596_v47 }
 0xe35   : > { %v2611_v57 = vmul.f32 %v2992_v54, %v2604_v55  ;;  %2623 = sbr.rel (%p2994_p8) target bundleno = 3643 (0xe3b), region = 104 }
 0xe37   : > { %v2618_v58 = vadd.f32 %v2993_v56, %v2611_v57 }
 0xe39   : > { %2619 = vst.msk [vmem:[#allocation2] sm:$0xff] %vm999_vm2, %v2618_v58 }
 0xe3a   : > { %2624 = vst.msk [vmem:[%s918_s4] sm:$0xff] %vm999_vm2, %v2618_v58 }
 0xe3b PF: > { %s3998_s15 = sld [smem:[#allocation6_spill]] }
 0xe3c   : > { %s3999_s0 = sld [smem:[#allocation4_spill]] }
 0xe3d   : > { %s4000_s30 = sld [smem:[#allocation5_spill]] }
 0xe3e   : > { %s4001_s20 = sld [smem:[#allocation7_spill]] }
 0xe3f   : > { %s4002_s21 = sld [smem:[#allocation8_spill]] }
 0xe41   : > { %s29_s1 = sadd.s32 1, %s3998_s15  }
 0xe42   : > { %p26_p9 = scmp.ge.s32.totalorder %s29_s1, 6  }
 0xe44   :  { %28 = sbr.rel (!%p26_p9) target bundleno = 20 (0x14), region = 188 }

</bundles_post_ra>
